<compile_context>
chip_gen: v7x
topology: tpu7x:2x2x1
jax: 0.10.0
libtpu: 0.0.40
codegen_flags: <defaults>
</compile_context>

<pallas_src>
import functools
import math

import jax
import jax.numpy as jnp
from jax.experimental import pallas as pl
from jax.experimental.pallas import tpu as pltpu


def _flash_attn_kernel(q_ref, k_ref, v_ref, wo_ref, bo_ref, o_ref,
                       m_scr, l_scr, acc_scr, *, num_heads):
    """One (batch, q_tile, kv_tile) grid step: online softmax + fused out-proj.

    q_ref   : (1, H, tq, hd) bf16   (Q already scaled by 1/sqrt(hd))
    k_ref   : (1, H, tk, hd) bf16
    v_ref   : (1, H, tk, hd) bf16
    wo_ref  : (H, hd, hidden) bf16  (output-projection weights, head-major)
    bo_ref  : (1, hidden) f32
    o_ref   : (1, tq, hidden)
    m_scr   : (H, tq, 1) f32   running max
    l_scr   : (H, tq, 1) f32   running denominator
    acc_scr : (H, tq, hd) f32  output accumulator
    """
    ki = pl.program_id(2)
    n_kv = pl.num_programs(2)

    # ---- q-tile prologue: accumulator init ---------------------------------
    @pl.when(ki == 0)
    def _():
        m_scr[...] = jnp.full_like(m_scr, -jnp.inf)
        l_scr[...] = jnp.zeros_like(l_scr)
        acc_scr[...] = jnp.zeros_like(acc_scr)

    q = q_ref[0]                                    # (H, tq, hd) bf16
    k = k_ref[0]                                    # (H, tk, hd) bf16
    v = v_ref[0]                                    # (H, tk, hd) bf16

    # Scores for all heads with a single batched matmul (no head slicing, no
    # in-kernel transpose: contraction is over the shared last dim).
    s = jnp.einsum('hqd,hkd->hqk', q, k,
                   preferred_element_type=jnp.float32)          # (H, tq, tk)

    m_prev = m_scr[...]                                          # (H, tq, 1)
    m_new = jnp.maximum(m_prev, jnp.max(s, axis=-1, keepdims=True))
    alpha = jnp.exp(m_prev - m_new)
    # TODO(synk): if profiling shows EUP saturation on v6e/v7x, compute this
    # exp on bf16 operands (keep m/l/alpha bookkeeping in f32).
    p = jnp.exp(s - m_new)                                       # (H, tq, tk) f32
    l_scr[...] = alpha * l_scr[...] + jnp.sum(p, axis=-1, keepdims=True)
    acc_scr[...] = alpha * acc_scr[...] + jnp.einsum(
        'hqk,hkd->hqd', p.astype(jnp.bfloat16), v,
        preferred_element_type=jnp.float32)
    m_scr[...] = m_new

    # ---- epilogue: normalize + fused merged-head output projection ---------
    @pl.when(ki == n_kv - 1)
    def _():
        tq = acc_scr.shape[1]
        hidden = o_ref.shape[-1]

        def head_out(h, out_acc):
            inv_l = pl.reciprocal(l_scr[h], approx=True)         # (tq, 1), EUP
            o_h = (acc_scr[h] * inv_l).astype(jnp.bfloat16)      # (tq, hd)
            return out_acc + jnp.dot(o_h, wo_ref[h],
                                     preferred_element_type=jnp.float32)

        out = jax.lax.fori_loop(0, num_heads, head_out,
                                jnp.zeros((tq, hidden), jnp.float32),
                                unroll=num_heads <= 4)
        o_ref[0] = (out + bo_ref[...]).astype(o_ref.dtype)


def _pick_tile(t, max_tile):
    for c in (512, 256, 128):
        if c <= max_tile and t % c == 0:
            return c
    return t


def _nbytes(shape, dtype):
    n = 1
    for s in shape:
        n *= int(s)
    return n * jnp.dtype(dtype).itemsize


def attention_pallas(tokens, wq, wk, wv, wo, bo, num_heads,
                     *, block_q=None, block_kv=None):
    """Self-attention forward matching the PyTorch module (context_dim=None)."""
    # TODO(synk): cross-attention path (context tokens + on-the-fly Linear for
    # mismatched context_C) is not implemented; self-attention only.
    B, T, C = tokens.shape
    E = wq.shape[0]              # embed_dim
    hidden = wo.shape[0]         # hidden_dim
    H = num_heads
    hd = hidden // H             # torch: head_dim = hidden_dim // num_heads
    assert E == H * hd, "torch .view(B,T,H,head_dim) requires embed_dim == num_heads*head_dim"
    scale = 1.0 / math.sqrt(hd)

    try:
        vmem_cap = pltpu.get_tpu_info().vmem_capacity_bytes
    except Exception:
        vmem_cap = 128 * 1024 * 1024
    # 64 MiB/TC parts (v7x): cap q tile at 256; 128 MiB parts (v5e/v6e): 512.
    max_tile = 256 if vmem_cap <= 64 * 1024 * 1024 else 512

    tq = block_q or _pick_tile(T, max_tile)
    tk = block_kv or _pick_tile(T, max_tile)
    assert T % tq == 0 and T % tk == 0

    # ---- one-time projections (plain XLA matmuls, bf16 MXU path) -----------
    # Emitted head-major (B, H, T, hd) so the kernel never slices heads out of
    # the lane dimension.  The softmax scale is folded into the Q weight.
    x16 = tokens.astype(jnp.bfloat16)
    wq3 = (wq.T * scale).reshape(C, H, hd).astype(jnp.bfloat16)
    wk3 = wk.T.reshape(C, H, hd).astype(jnp.bfloat16)
    wv3 = wv.T.reshape(C, H, hd).astype(jnp.bfloat16)
    q = jnp.einsum('btc,chd->bhtd', x16, wq3,
                   preferred_element_type=jnp.float32).astype(jnp.bfloat16)
    k = jnp.einsum('btc,chd->bhtd', x16, wk3,
                   preferred_element_type=jnp.float32).astype(jnp.bfloat16)
    v = jnp.einsum('btc,chd->bhtd', x16, wv3,
                   preferred_element_type=jnp.float32).astype(jnp.bfloat16)
    w_o = wo.T.reshape(H, hd, hidden).astype(jnp.bfloat16)   # head-major out-proj
    b_o = bo.reshape(1, hidden).astype(jnp.float32)

    n_q, n_kv = T // tq, T // tk
    grid = (B, n_q, n_kv)
    out_dtype = tokens.dtype

    kernel = functools.partial(_flash_attn_kernel, num_heads=H)

    # Advisory cost estimate (kernel work only: attention + output projection).
    flops = 4 * B * H * T * T * hd + 2 * B * T * E * hidden
    bytes_accessed = (_nbytes((B, H, T, hd), jnp.bfloat16)              # Q
                      + 2 * n_q * _nbytes((B, H, T, hd), jnp.bfloat16)  # K,V re-read per q tile
                      + _nbytes((H, hd, hidden), jnp.bfloat16)
                      + _nbytes((1, hidden), jnp.float32)
                      + _nbytes((B, T, hidden), out_dtype))
    cost = pl.CostEstimate(flops=flops, transcendentals=B * H * T * T,
                           bytes_accessed=bytes_accessed)

    def _call(single_buffer_weights):
        # Grid-invariant blocks (weights/bias): double-buffering is pure VMEM
        # waste, so request a single buffer when supported.
        wkw = {}
        if single_buffer_weights and hasattr(pl, "Buffered"):
            wkw = dict(pipeline_mode=pl.Buffered(1))

        in_specs = [
            pl.BlockSpec((1, H, tq, hd), lambda b, qi, ki: (b, 0, qi, 0)),   # Q
            pl.BlockSpec((1, H, tk, hd), lambda b, qi, ki: (b, 0, ki, 0)),   # K
            pl.BlockSpec((1, H, tk, hd), lambda b, qi, ki: (b, 0, ki, 0)),   # V
            pl.BlockSpec((H, hd, hidden), lambda b, qi, ki: (0, 0, 0), **wkw),  # W_o
            pl.BlockSpec((1, hidden), lambda b, qi, ki: (0, 0), **wkw),         # b_o
        ]

        # VMEM budget from the actual buffer sum (streaming tiles double-
        # buffered, weights x buffer count, f32 scratch), with slack.
        wbuf = 1 if single_buffer_weights else 2
        vmem_bytes = (2 * _nbytes((1, H, tq, hd), jnp.bfloat16)
                      + 2 * 2 * _nbytes((1, H, tk, hd), jnp.bfloat16)
                      + wbuf * _nbytes((H, hd, hidden), jnp.bfloat16)
                      + wbuf * _nbytes((1, hidden), jnp.float32)
                      + 2 * _nbytes((1, tq, hidden), out_dtype)
                      + 2 * _nbytes((H, tq, 1), jnp.float32)
                      + _nbytes((H, tq, hd), jnp.float32))
        vmem_limit = int(min(max(32 * 1024 * 1024, vmem_bytes * 5 // 4),
                             vmem_cap * 3 // 4))

        return pl.pallas_call(
            kernel,
            out_shape=jax.ShapeDtypeStruct((B, T, hidden), out_dtype),
            grid_spec=pltpu.PrefetchScalarGridSpec(
                num_scalar_prefetch=0,
                grid=grid,
                in_specs=in_specs,
                out_specs=pl.BlockSpec((1, tq, hidden),
                                       lambda b, qi, ki: (b, qi, 0)),
                scratch_shapes=[
                    pltpu.VMEM((H, tq, 1), jnp.float32),    # running max
                    pltpu.VMEM((H, tq, 1), jnp.float32),    # running denom
                    pltpu.VMEM((H, tq, hd), jnp.float32),   # output accumulator
                ],
            ),
            compiler_params=pltpu.CompilerParams(
                dimension_semantics=("parallel", "parallel", "arbitrary"),
                vmem_limit_bytes=vmem_limit,
            ),
            cost_estimate=cost,
        )(q, k, v, w_o, b_o)

    try:
        return _call(True)
    except Exception:
        # pipeline_mode=pl.Buffered(1) rejected by this jax/backend version:
        # fall back to default double-buffered weight blocks.
        return _call(False)


def attention_ref(tokens, wq, wk, wv, wo, bo, num_heads):
    """Pure-JAX reference mirroring the PyTorch forward exactly."""
    B, T, C = tokens.shape
    E = wq.shape[0]
    hidden = wo.shape[0]
    H = num_heads
    hd = hidden // H
    Q = (tokens @ wq.T).reshape(B, T, H, hd).transpose(0, 2, 1, 3)
    K = (tokens @ wk.T).reshape(B, T, H, hd).transpose(0, 2, 1, 3)
    V = (tokens @ wv.T).reshape(B, T, H, hd).transpose(0, 2, 1, 3)
    s = jnp.einsum("bhtd,bhsd->bhts", Q, K) / math.sqrt(hd)
    p = jax.nn.softmax(s, axis=-1)
    o = jnp.einsum("bhts,bhsd->bhtd", p, V)
    o = o.transpose(0, 2, 1, 3).reshape(B, T, E)
    return o @ wo.T + bo


if __name__ == "__main__":
    # Module hyper-params (self-attention: context_dim=None).
    embed_dim = 32
    hidden_dim = 32
    num_heads = 4
    B, T = 2, 8

    key = jax.random.PRNGKey(0)
    k_x, k_q, k_k, k_v, k_w, k_b = jax.random.split(key, 6)

    tokens = jax.random.normal(k_x, (B, T, hidden_dim), dtype=jnp.float32)

    # Deterministic parameter init (PyTorch Linear convention: W[out, in]).
    def init_w(k, out_f, in_f):
        bound = 1.0 / math.sqrt(in_f)
        return jax.random.uniform(k, (out_f, in_f), jnp.float32, -bound, bound)

    wq = init_w(k_q, embed_dim, hidden_dim)      # Q: hidden -> embed
    wk = init_w(k_k, embed_dim, hidden_dim)      # K: context(=hidden) -> embed
    wv = init_w(k_v, embed_dim, hidden_dim)      # V: context(=hidden) -> embed
    wo = init_w(k_w, hidden_dim, embed_dim)      # out: embed -> hidden
    bo = jax.random.uniform(k_b, (hidden_dim,), jnp.float32,
                            -1.0 / math.sqrt(embed_dim), 1.0 / math.sqrt(embed_dim))

    out = attention_pallas(tokens, wq, wk, wv, wo, bo, num_heads)
    out = jax.block_until_ready(out)

    ref = attention_ref(tokens, wq, wk, wv, wo, bo, num_heads)
    assert out.shape == (B, T, hidden_dim)
    # bf16 MXU operands (f32 accumulation) -> loosened tolerance vs f32 reference.
    assert jnp.allclose(out, ref, atol=5e-2, rtol=5e-2), \
        f"max abs err {jnp.max(jnp.abs(out - ref))}"

    print("KERNEL_OK")
</pallas_src>

<mosaic_0001>
module attributes {stable_mosaic.version = 11 : i64} {
  func.func @_flash_attn_kernel(%arg0: i32, %arg1: i32, %arg2: i32, %arg3: memref<1x4x8x8xbf16, #tpu.memory_space<vmem>>, %arg4: memref<1x4x8x8xbf16, #tpu.memory_space<vmem>>, %arg5: memref<1x4x8x8xbf16, #tpu.memory_space<vmem>>, %arg6: memref<4x8x32xbf16, #tpu.memory_space<vmem>>, %arg7: memref<1x32xf32, #tpu.memory_space<vmem>>, %arg8: memref<1x8x32xf32, #tpu.memory_space<vmem>>, %arg9: memref<4x8x1xf32, #tpu.memory_space<vmem>>, %arg10: memref<4x8x1xf32, #tpu.memory_space<vmem>>, %arg11: memref<4x8x8xf32, #tpu.memory_space<vmem>>) attributes {dimension_semantics = [#tpu.dimension_semantics<parallel>, #tpu.dimension_semantics<parallel>, #tpu.dimension_semantics<arbitrary>], iteration_bounds = array<i64: 2, 1, 1>, scalar_prefetch = 0 : i64, scratch_operands = 3 : i64, tpu.core_type = #tpu.core_type<tc>, window_params = [{transform_indices = @transform_0, window_bounds = array<i64: 1, 4, 8, 8>}, {transform_indices = @transform_1, window_bounds = array<i64: 1, 4, 8, 8>}, {transform_indices = @transform_2, window_bounds = array<i64: 1, 4, 8, 8>}, {pipeline_mode = #tpu.pipeline_mode<synchronous>, transform_indices = @transform_3, window_bounds = array<i64: 4, 8, 32>}, {pipeline_mode = #tpu.pipeline_mode<synchronous>, transform_indices = @transform_4, window_bounds = array<i64: 1, 32>}, {transform_indices = @transform_5, window_bounds = array<i64: 1, 8, 32>}]} {
    %c0_i32 = arith.constant 0 : i32
    %0 = arith.cmpi eq, %arg2, %c0_i32 : i32
    %1 = arith.extui %0 : i1 to i32
    %c0_i32_0 = arith.constant 0 : i32
    %2 = arith.cmpi ne, %1, %c0_i32_0 : i32
    scf.if %2 {
      %cst_35 = arith.constant 0xFF800000 : f32
      %36 = vector.broadcast %cst_35 : f32 to vector<4x8x1xf32>
      %c0_36 = arith.constant 0 : index
      %c0_37 = arith.constant 0 : index
      %c0_38 = arith.constant 0 : index
      %37 = vector.load %arg9[%c0_36, %c0_37, %c0_38] : memref<4x8x1xf32, #tpu.memory_space<vmem>>, vector<4x8x1xf32>
      tpu.vector_store %arg9[%c0_36, %c0_37, %c0_38], %36 {strides = array<i32>} : memref<4x8x1xf32, #tpu.memory_space<vmem>>, vector<4x8x1xf32>,
      %cst_39 = arith.constant 0.000000e+00 : f32
      %38 = vector.broadcast %cst_39 : f32 to vector<4x8x1xf32>
      %c0_40 = arith.constant 0 : index
      %c0_41 = arith.constant 0 : index
      %c0_42 = arith.constant 0 : index
      %39 = vector.load %arg10[%c0_40, %c0_41, %c0_42] : memref<4x8x1xf32, #tpu.memory_space<vmem>>, vector<4x8x1xf32>
      tpu.vector_store %arg10[%c0_40, %c0_41, %c0_42], %38 {strides = array<i32>} : memref<4x8x1xf32, #tpu.memory_space<vmem>>, vector<4x8x1xf32>,
      %cst_43 = arith.constant 0.000000e+00 : f32
      %40 = vector.broadcast %cst_43 : f32 to vector<4x8x8xf32>
      %c0_44 = arith.constant 0 : index
      %c0_45 = arith.constant 0 : index
      %c0_46 = arith.constant 0 : index
      %41 = vector.load %arg11[%c0_44, %c0_45, %c0_46] : memref<4x8x8xf32, #tpu.memory_space<vmem>>, vector<4x8x8xf32>
      tpu.vector_store %arg11[%c0_44, %c0_45, %c0_46], %40 {strides = array<i32>} : memref<4x8x8xf32, #tpu.memory_space<vmem>>, vector<4x8x8xf32>,
    } else {
    }
    %c0 = arith.constant 0 : index
    %c0_1 = arith.constant 0 : index
    %c0_2 = arith.constant 0 : index
    %c0_3 = arith.constant 0 : index
    %3 = vector.load %arg3[%c0, %c0_1, %c0_2, %c0_3] : memref<1x4x8x8xbf16, #tpu.memory_space<vmem>>, vector<1x4x8x8xbf16>
    %4 = vector.shape_cast %3 : vector<1x4x8x8xbf16> to vector<4x8x8xbf16>
    %c0_4 = arith.constant 0 : index
    %c0_5 = arith.constant 0 : index
    %c0_6 = arith.constant 0 : index
    %c0_7 = arith.constant 0 : index
    %5 = vector.load %arg4[%c0_4, %c0_5, %c0_6, %c0_7] : memref<1x4x8x8xbf16, #tpu.memory_space<vmem>>, vector<1x4x8x8xbf16>
    %6 = vector.shape_cast %5 : vector<1x4x8x8xbf16> to vector<4x8x8xbf16>
    %c0_8 = arith.constant 0 : index
    %c0_9 = arith.constant 0 : index
    %c0_10 = arith.constant 0 : index
    %c0_11 = arith.constant 0 : index
    %7 = vector.load %arg5[%c0_8, %c0_9, %c0_10, %c0_11] : memref<1x4x8x8xbf16, #tpu.memory_space<vmem>>, vector<1x4x8x8xbf16>
    %8 = vector.shape_cast %7 : vector<1x4x8x8xbf16> to vector<4x8x8xbf16>
    "tpu.trace_start"() <{level = 10 : i32, message = "hqd,hkd->hqk"}> : () -> ()
    %cst = arith.constant dense<0.000000e+00> : vector<4x8x8xf32>
    %9 = tpu.matmul %4, %6, %cst {dimension_numbers = #tpu.dot_dimension_numbers<[2], [2], [1], [1], [0, 0, 0, 1, 1, 1], [0], [0]>} : vector<4x8x8xbf16>, vector<4x8x8xbf16>, vector<4x8x8xf32> -> vector<4x8x8xf32>
    "tpu.trace_stop"() : () -> ()
    %c0_12 = arith.constant 0 : index
    %c0_13 = arith.constant 0 : index
    %c0_14 = arith.constant 0 : index
    %10 = vector.load %arg9[%c0_12, %c0_13, %c0_14] : memref<4x8x1xf32, #tpu.memory_space<vmem>>, vector<4x8x1xf32>
    %cst_15 = arith.constant dense<0xFF800000> : vector<4x8xf32>
    %11 = vector.multi_reduction <maximumf>, %9, %cst_15 [2] : vector<4x8x8xf32> to vector<4x8xf32>
    %12 = vector.shape_cast %11 : vector<4x8xf32> to vector<4x8x1xf32>
    %13 = arith.maximumf %10, %12 : vector<4x8x1xf32>
    %14 = arith.subf %10, %13 : vector<4x8x1xf32>
    %15 = math.exp %14 : vector<4x8x1xf32>
    %16 = vector.broadcast %13 : vector<4x8x1xf32> to vector<4x8x8xf32>
    %17 = arith.subf %9, %16 : vector<4x8x8xf32>
    %18 = math.exp %17 : vector<4x8x8xf32>
    %c0_16 = arith.constant 0 : index
    %c0_17 = arith.constant 0 : index
    %c0_18 = arith.constant 0 : index
    %19 = vector.load %arg10[%c0_16, %c0_17, %c0_18] : memref<4x8x1xf32, #tpu.memory_space<vmem>>, vector<4x8x1xf32>
    %20 = arith.mulf %15, %19 : vector<4x8x1xf32>
    %cst_19 = arith.constant dense<0.000000e+00> : vector<4x8xf32>
    %21 = vector.multi_reduction <add>, %18, %cst_19 [2] : vector<4x8x8xf32> to vector<4x8xf32>
    %22 = vector.shape_cast %21 : vector<4x8xf32> to vector<4x8x1xf32>
    %23 = arith.addf %20, %22 : vector<4x8x1xf32>
    %c0_20 = arith.constant 0 : index
    %c0_21 = arith.constant 0 : index
    %c0_22 = arith.constant 0 : index
    %24 = vector.load %arg10[%c0_20, %c0_21, %c0_22] : memref<4x8x1xf32, #tpu.memory_space<vmem>>, vector<4x8x1xf32>
    tpu.vector_store %arg10[%c0_20, %c0_21, %c0_22], %23 {strides = array<i32>} : memref<4x8x1xf32, #tpu.memory_space<vmem>>, vector<4x8x1xf32>,
    %c0_23 = arith.constant 0 : index
    %c0_24 = arith.constant 0 : index
    %c0_25 = arith.constant 0 : index
    %25 = vector.load %arg11[%c0_23, %c0_24, %c0_25] : memref<4x8x8xf32, #tpu.memory_space<vmem>>, vector<4x8x8xf32>
    %26 = vector.broadcast %15 : vector<4x8x1xf32> to vector<4x8x8xf32>
    %27 = arith.mulf %26, %25 : vector<4x8x8xf32>
    %28 = arith.truncf %18 : vector<4x8x8xf32> to vector<4x8x8xbf16>
    "tpu.trace_start"() <{level = 10 : i32, message = "hqk,hkd->hqd"}> : () -> ()
    %cst_26 = arith.constant dense<0.000000e+00> : vector<4x8x8xf32>
    %29 = tpu.matmul %28, %8, %cst_26 {dimension_numbers = #tpu.dot_dimension_numbers<[2], [1], [1], [2], [0, 0, 0, 1, 1, 2], [0], [0]>} : vector<4x8x8xbf16>, vector<4x8x8xbf16>, vector<4x8x8xf32> -> vector<4x8x8xf32>
    "tpu.trace_stop"() : () -> ()
    %30 = arith.addf %27, %29 : vector<4x8x8xf32>
    %c0_27 = arith.constant 0 : index
    %c0_28 = arith.constant 0 : index
    %c0_29 = arith.constant 0 : index
    %31 = vector.load %arg11[%c0_27, %c0_28, %c0_29] : memref<4x8x8xf32, #tpu.memory_space<vmem>>, vector<4x8x8xf32>
    tpu.vector_store %arg11[%c0_27, %c0_28, %c0_29], %30 {strides = array<i32>} : memref<4x8x8xf32, #tpu.memory_space<vmem>>, vector<4x8x8xf32>,
    %c0_30 = arith.constant 0 : index
    %c0_31 = arith.constant 0 : index
    %c0_32 = arith.constant 0 : index
    %32 = vector.load %arg9[%c0_30, %c0_31, %c0_32] : memref<4x8x1xf32, #tpu.memory_space<vmem>>, vector<4x8x1xf32>
    tpu.vector_store %arg9[%c0_30, %c0_31, %c0_32], %13 {strides = array<i32>} : memref<4x8x1xf32, #tpu.memory_space<vmem>>, vector<4x8x1xf32>,
    %c0_i32_33 = arith.constant 0 : i32
    %33 = arith.cmpi eq, %arg2, %c0_i32_33 : i32
    %34 = arith.extui %33 : i1 to i32
    %c0_i32_34 = arith.constant 0 : i32
    %35 = arith.cmpi ne, %34, %c0_i32_34 : i32
    scf.if %35 {
      %cst_35 = arith.constant 0.000000e+00 : f32
      %36 = vector.broadcast %cst_35 : f32 to vector<8x32xf32>
      %c0_i32_36 = arith.constant 0 : i32
      %37 = arith.index_cast %c0_i32_36 : i32 to index
      %c0_37 = arith.constant 0 : index
      %c0_38 = arith.constant 0 : index
      %38 = vector.load %arg10[%37, %c0_37, %c0_38] : memref<4x8x1xf32, #tpu.memory_space<vmem>>, vector<1x8x1xf32>
      %39 = vector.shape_cast %38 : vector<1x8x1xf32> to vector<8x1xf32>
      %40 = tpu.reciprocal %39 {approx = true} : vector<8x1xf32> -> vector<8x1xf32>
      %41 = arith.index_cast %c0_i32_36 : i32 to index
      %c0_39 = arith.constant 0 : index
      %c0_40 = arith.constant 0 : index
      %42 = vector.load %arg11[%41, %c0_39, %c0_40] : memref<4x8x8xf32, #tpu.memory_space<vmem>>, vector<1x8x8xf32>
      %43 = vector.shape_cast %42 : vector<1x8x8xf32> to vector<8x8xf32>
      %44 = vector.broadcast %40 : vector<8x1xf32> to vector<8x8xf32>
      %45 = arith.mulf %43, %44 : vector<8x8xf32>
      %46 = arith.truncf %45 : vector<8x8xf32> to vector<8x8xbf16>
      %47 = arith.index_cast %c0_i32_36 : i32 to index
      %c0_41 = arith.constant 0 : index
      %c0_42 = arith.constant 0 : index
      %48 = vector.load %arg6[%47, %c0_41, %c0_42] : memref<4x8x32xbf16, #tpu.memory_space<vmem>>, vector<1x8x32xbf16>
      %49 = vector.shape_cast %48 : vector<1x8x32xbf16> to vector<8x32xbf16>
      %cst_43 = arith.constant dense<0.000000e+00> : vector<8x32xf32>
      %50 = tpu.matmul %46, %49, %cst_43 {dimension_numbers = #tpu.dot_dimension_numbers<[1], [0], [0], [1], [0, 0, 1, 1], [], []>} : vector<8x8xbf16>, vector<8x32xbf16>, vector<8x32xf32> -> vector<8x32xf32>
      %51 = arith.addf %36, %50 : vector<8x32xf32>
      %c1_i32 = arith.constant 1 : i32
      %52 = arith.index_cast %c1_i32 : i32 to index
      %c0_44 = arith.constant 0 : index
      %c0_45 = arith.constant 0 : index
      %53 = vector.load %arg10[%52, %c0_44, %c0_45] : memref<4x8x1xf32, #tpu.memory_space<vmem>>, vector<1x8x1xf32>
      %54 = vector.shape_cast %53 : vector<1x8x1xf32> to vector<8x1xf32>
      %55 = tpu.reciprocal %54 {approx = true} : vector<8x1xf32> -> vector<8x1xf32>
      %56 = arith.index_cast %c1_i32 : i32 to index
      %c0_46 = arith.constant 0 : index
      %c0_47 = arith.constant 0 : index
      %57 = vector.load %arg11[%56, %c0_46, %c0_47] : memref<4x8x8xf32, #tpu.memory_space<vmem>>, vector<1x8x8xf32>
      %58 = vector.shape_cast %57 : vector<1x8x8xf32> to vector<8x8xf32>
      %59 = vector.broadcast %55 : vector<8x1xf32> to vector<8x8xf32>
      %60 = arith.mulf %58, %59 : vector<8x8xf32>
      %61 = arith.truncf %60 : vector<8x8xf32> to vector<8x8xbf16>
      %62 = arith.index_cast %c1_i32 : i32 to index
      %c0_48 = arith.constant 0 : index
      %c0_49 = arith.constant 0 : index
      %63 = vector.load %arg6[%62, %c0_48, %c0_49] : memref<4x8x32xbf16, #tpu.memory_space<vmem>>, vector<1x8x32xbf16>
      %64 = vector.shape_cast %63 : vector<1x8x32xbf16> to vector<8x32xbf16>
      %cst_50 = arith.constant dense<0.000000e+00> : vector<8x32xf32>
      %65 = tpu.matmul %61, %64, %cst_50 {dimension_numbers = #tpu.dot_dimension_numbers<[1], [0], [0], [1], [0, 0, 1, 1], [], []>} : vector<8x8xbf16>, vector<8x32xbf16>, vector<8x32xf32> -> vector<8x32xf32>
      %66 = arith.addf %51, %65 : vector<8x32xf32>
      %c2_i32 = arith.constant 2 : i32
      %67 = arith.index_cast %c2_i32 : i32 to index
      %c0_51 = arith.constant 0 : index
      %c0_52 = arith.constant 0 : index
      %68 = vector.load %arg10[%67, %c0_51, %c0_52] : memref<4x8x1xf32, #tpu.memory_space<vmem>>, vector<1x8x1xf32>
      %69 = vector.shape_cast %68 : vector<1x8x1xf32> to vector<8x1xf32>
      %70 = tpu.reciprocal %69 {approx = true} : vector<8x1xf32> -> vector<8x1xf32>
      %71 = arith.index_cast %c2_i32 : i32 to index
      %c0_53 = arith.constant 0 : index
      %c0_54 = arith.constant 0 : index
      %72 = vector.load %arg11[%71, %c0_53, %c0_54] : memref<4x8x8xf32, #tpu.memory_space<vmem>>, vector<1x8x8xf32>
      %73 = vector.shape_cast %72 : vector<1x8x8xf32> to vector<8x8xf32>
      %74 = vector.broadcast %70 : vector<8x1xf32> to vector<8x8xf32>
      %75 = arith.mulf %73, %74 : vector<8x8xf32>
      %76 = arith.truncf %75 : vector<8x8xf32> to vector<8x8xbf16>
      %77 = arith.index_cast %c2_i32 : i32 to index
      %c0_55 = arith.constant 0 : index
      %c0_56 = arith.constant 0 : index
      %78 = vector.load %arg6[%77, %c0_55, %c0_56] : memref<4x8x32xbf16, #tpu.memory_space<vmem>>, vector<1x8x32xbf16>
      %79 = vector.shape_cast %78 : vector<1x8x32xbf16> to vector<8x32xbf16>
      %cst_57 = arith.constant dense<0.000000e+00> : vector<8x32xf32>
      %80 = tpu.matmul %76, %79, %cst_57 {dimension_numbers = #tpu.dot_dimension_numbers<[1], [0], [0], [1], [0, 0, 1, 1], [], []>} : vector<8x8xbf16>, vector<8x32xbf16>, vector<8x32xf32> -> vector<8x32xf32>
      %81 = arith.addf %66, %80 : vector<8x32xf32>
      %c3_i32 = arith.constant 3 : i32
      %82 = arith.index_cast %c3_i32 : i32 to index
      %c0_58 = arith.constant 0 : index
      %c0_59 = arith.constant 0 : index
      %83 = vector.load %arg10[%82, %c0_58, %c0_59] : memref<4x8x1xf32, #tpu.memory_space<vmem>>, vector<1x8x1xf32>
      %84 = vector.shape_cast %83 : vector<1x8x1xf32> to vector<8x1xf32>
      %85 = tpu.reciprocal %84 {approx = true} : vector<8x1xf32> -> vector<8x1xf32>
      %86 = arith.index_cast %c3_i32 : i32 to index
      %c0_60 = arith.constant 0 : index
      %c0_61 = arith.constant 0 : index
      %87 = vector.load %arg11[%86, %c0_60, %c0_61] : memref<4x8x8xf32, #tpu.memory_space<vmem>>, vector<1x8x8xf32>
      %88 = vector.shape_cast %87 : vector<1x8x8xf32> to vector<8x8xf32>
      %89 = vector.broadcast %85 : vector<8x1xf32> to vector<8x8xf32>
      %90 = arith.mulf %88, %89 : vector<8x8xf32>
      %91 = arith.truncf %90 : vector<8x8xf32> to vector<8x8xbf16>
      %92 = arith.index_cast %c3_i32 : i32 to index
      %c0_62 = arith.constant 0 : index
      %c0_63 = arith.constant 0 : index
      %93 = vector.load %arg6[%92, %c0_62, %c0_63] : memref<4x8x32xbf16, #tpu.memory_space<vmem>>, vector<1x8x32xbf16>
      %94 = vector.shape_cast %93 : vector<1x8x32xbf16> to vector<8x32xbf16>
      %cst_64 = arith.constant dense<0.000000e+00> : vector<8x32xf32>
      %95 = tpu.matmul %91, %94, %cst_64 {dimension_numbers = #tpu.dot_dimension_numbers<[1], [0], [0], [1], [0, 0, 1, 1], [], []>} : vector<8x8xbf16>, vector<8x32xbf16>, vector<8x32xf32> -> vector<8x32xf32>
      %96 = arith.addf %81, %95 : vector<8x32xf32>
      %c4_i32 = arith.constant 4 : i32
      %c0_65 = arith.constant 0 : index
      %c0_66 = arith.constant 0 : index
      %97 = vector.load %arg7[%c0_65, %c0_66] : memref<1x32xf32, #tpu.memory_space<vmem>>, vector<1x32xf32>
      %98 = vector.broadcast %97 : vector<1x32xf32> to vector<8x32xf32>
      %99 = arith.addf %96, %98 : vector<8x32xf32>
      %c0_67 = arith.constant 0 : index
      %c0_68 = arith.constant 0 : index
      %c0_69 = arith.constant 0 : index
      %100 = vector.load %arg8[%c0_67, %c0_68, %c0_69] : memref<1x8x32xf32, #tpu.memory_space<vmem>>, vector<1x8x32xf32>
      %101 = vector.shape_cast %100 : vector<1x8x32xf32> to vector<8x32xf32>
      %102 = vector.shape_cast %99 : vector<8x32xf32> to vector<1x8x32xf32>
      tpu.vector_store %arg8[%c0_67, %c0_68, %c0_69], %102 {strides = array<i32>} : memref<1x8x32xf32, #tpu.memory_space<vmem>>, vector<1x8x32xf32>,
    } else {
    }
    return
  }
  func.func @transform_0(%arg0: i32, %arg1: i32, %arg2: i32) -> (i32, i32, i32, i32) {
    %c0_i32 = arith.constant 0 : i32
    %c0_i32_0 = arith.constant 0 : i32
    %c0_i32_1 = arith.constant 0 : i32
    return %arg0, %c0_i32, %arg1, %c0_i32_0 : i32, i32, i32, i32
  }
  func.func @transform_1(%arg0: i32, %arg1: i32, %arg2: i32) -> (i32, i32, i32, i32) {
    %c0_i32 = arith.constant 0 : i32
    %c0_i32_0 = arith.constant 0 : i32
    %c0_i32_1 = arith.constant 0 : i32
    return %arg0, %c0_i32, %arg2, %c0_i32_0 : i32, i32, i32, i32
  }
  func.func @transform_2(%arg0: i32, %arg1: i32, %arg2: i32) -> (i32, i32, i32, i32) {
    %c0_i32 = arith.constant 0 : i32
    %c0_i32_0 = arith.constant 0 : i32
    %c0_i32_1 = arith.constant 0 : i32
    return %arg0, %c0_i32, %arg2, %c0_i32_0 : i32, i32, i32, i32
  }
  func.func @transform_3(%arg0: i32, %arg1: i32, %arg2: i32) -> (i32, i32, i32) {
    %c0_i32 = arith.constant 0 : i32
    %c0_i32_0 = arith.constant 0 : i32
    %c0_i32_1 = arith.constant 0 : i32
    %c0_i32_2 = arith.constant 0 : i32
    return %c0_i32, %c0_i32_0, %c0_i32_1 : i32, i32, i32
  }
  func.func @transform_4(%arg0: i32, %arg1: i32, %arg2: i32) -> (i32, i32) {
    %c0_i32 = arith.constant 0 : i32
    %c0_i32_0 = arith.constant 0 : i32
    %c0_i32_1 = arith.constant 0 : i32
    return %c0_i32, %c0_i32_0 : i32, i32
  }
  func.func @transform_5(%arg0: i32, %arg1: i32, %arg2: i32) -> (i32, i32, i32) {
    %c0_i32 = arith.constant 0 : i32
    %c0_i32_0 = arith.constant 0 : i32
    return %arg0, %arg1, %c0_i32 : i32, i32, i32
  }
}

module attributes {stable_mosaic.version = 11 : i64} {
  func.func @_flash_attn_kernel(%arg0: i32, %arg1: i32, %arg2: i32, %arg3: memref<1x4x8x8xbf16, #tpu.memory_space<vmem>>, %arg4: memref<1x4x8x8xbf16, #tpu.memory_space<vmem>>, %arg5: memref<1x4x8x8xbf16, #tpu.memory_space<vmem>>, %arg6: memref<4x8x32xbf16, #tpu.memory_space<vmem>>, %arg7: memref<1x32xf32, #tpu.memory_space<vmem>>, %arg8: memref<1x8x32xf32, #tpu.memory_space<vmem>>, %arg9: memref<4x8x1xf32, #tpu.memory_space<vmem>>, %arg10: memref<4x8x1xf32, #tpu.memory_space<vmem>>, %arg11: memref<4x8x8xf32, #tpu.memory_space<vmem>>) attributes {dimension_semantics = [#tpu.dimension_semantics<parallel>, #tpu.dimension_semantics<parallel>, #tpu.dimension_semantics<arbitrary>], iteration_bounds = array<i64: 2, 1, 1>, scalar_prefetch = 0 : i64, scratch_operands = 3 : i64, tpu.core_type = #tpu.core_type<tc>, window_params = [{transform_indices = @transform_0, window_bounds = array<i64: 1, 4, 8, 8>}, {transform_indices = @transform_1, window_bounds = array<i64: 1, 4, 8, 8>}, {transform_indices = @transform_2, window_bounds = array<i64: 1, 4, 8, 8>}, {pipeline_mode = #tpu.pipeline_mode<synchronous>, transform_indices = @transform_3, window_bounds = array<i64: 4, 8, 32>}, {pipeline_mode = #tpu.pipeline_mode<synchronous>, transform_indices = @transform_4, window_bounds = array<i64: 1, 32>}, {transform_indices = @transform_5, window_bounds = array<i64: 1, 8, 32>}]} {
    %c0_i32 = arith.constant 0 : i32
    %0 = arith.cmpi eq, %arg2, %c0_i32 : i32
    %1 = arith.extui %0 : i1 to i32
    %c0_i32_0 = arith.constant 0 : i32
    %2 = arith.cmpi ne, %1, %c0_i32_0 : i32
    scf.if %2 {
      %cst_35 = arith.constant 0xFF800000 : f32
      %36 = vector.broadcast %cst_35 : f32 to vector<4x8x1xf32>
      %c0_36 = arith.constant 0 : index
      %c0_37 = arith.constant 0 : index
      %c0_38 = arith.constant 0 : index
      %37 = vector.load %arg9[%c0_36, %c0_37, %c0_38] : memref<4x8x1xf32, #tpu.memory_space<vmem>>, vector<4x8x1xf32>
      tpu.vector_store %arg9[%c0_36, %c0_37, %c0_38], %36 {strides = array<i32>} : memref<4x8x1xf32, #tpu.memory_space<vmem>>, vector<4x8x1xf32>,
      %cst_39 = arith.constant 0.000000e+00 : f32
      %38 = vector.broadcast %cst_39 : f32 to vector<4x8x1xf32>
      %c0_40 = arith.constant 0 : index
      %c0_41 = arith.constant 0 : index
      %c0_42 = arith.constant 0 : index
      %39 = vector.load %arg10[%c0_40, %c0_41, %c0_42] : memref<4x8x1xf32, #tpu.memory_space<vmem>>, vector<4x8x1xf32>
      tpu.vector_store %arg10[%c0_40, %c0_41, %c0_42], %38 {strides = array<i32>} : memref<4x8x1xf32, #tpu.memory_space<vmem>>, vector<4x8x1xf32>,
      %cst_43 = arith.constant 0.000000e+00 : f32
      %40 = vector.broadcast %cst_43 : f32 to vector<4x8x8xf32>
      %c0_44 = arith.constant 0 : index
      %c0_45 = arith.constant 0 : index
      %c0_46 = arith.constant 0 : index
      %41 = vector.load %arg11[%c0_44, %c0_45, %c0_46] : memref<4x8x8xf32, #tpu.memory_space<vmem>>, vector<4x8x8xf32>
      tpu.vector_store %arg11[%c0_44, %c0_45, %c0_46], %40 {strides = array<i32>} : memref<4x8x8xf32, #tpu.memory_space<vmem>>, vector<4x8x8xf32>,
    } else {
    }
    %c0 = arith.constant 0 : index
    %c0_1 = arith.constant 0 : index
    %c0_2 = arith.constant 0 : index
    %c0_3 = arith.constant 0 : index
    %3 = vector.load %arg3[%c0, %c0_1, %c0_2, %c0_3] : memref<1x4x8x8xbf16, #tpu.memory_space<vmem>>, vector<1x4x8x8xbf16>
    %4 = vector.shape_cast %3 : vector<1x4x8x8xbf16> to vector<4x8x8xbf16>
    %c0_4 = arith.constant 0 : index
    %c0_5 = arith.constant 0 : index
    %c0_6 = arith.constant 0 : index
    %c0_7 = arith.constant 0 : index
    %5 = vector.load %arg4[%c0_4, %c0_5, %c0_6, %c0_7] : memref<1x4x8x8xbf16, #tpu.memory_space<vmem>>, vector<1x4x8x8xbf16>
    %6 = vector.shape_cast %5 : vector<1x4x8x8xbf16> to vector<4x8x8xbf16>
    %c0_8 = arith.constant 0 : index
    %c0_9 = arith.constant 0 : index
    %c0_10 = arith.constant 0 : index
    %c0_11 = arith.constant 0 : index
    %7 = vector.load %arg5[%c0_8, %c0_9, %c0_10, %c0_11] : memref<1x4x8x8xbf16, #tpu.memory_space<vmem>>, vector<1x4x8x8xbf16>
    %8 = vector.shape_cast %7 : vector<1x4x8x8xbf16> to vector<4x8x8xbf16>
    "tpu.trace_start"() <{level = 10 : i32, message = "hqd,hkd->hqk"}> : () -> ()
    %cst = arith.constant dense<0.000000e+00> : vector<4x8x8xf32>
    %9 = tpu.matmul %4, %6, %cst {dimension_numbers = #tpu.dot_dimension_numbers<[2], [2], [1], [1], [0, 0, 0, 1, 1, 1], [0], [0]>} : vector<4x8x8xbf16>, vector<4x8x8xbf16>, vector<4x8x8xf32> -> vector<4x8x8xf32>
    "tpu.trace_stop"() : () -> ()
    %c0_12 = arith.constant 0 : index
    %c0_13 = arith.constant 0 : index
    %c0_14 = arith.constant 0 : index
    %10 = vector.load %arg9[%c0_12, %c0_13, %c0_14] : memref<4x8x1xf32, #tpu.memory_space<vmem>>, vector<4x8x1xf32>
    %cst_15 = arith.constant dense<0xFF800000> : vector<4x8xf32>
    %11 = vector.multi_reduction <maximumf>, %9, %cst_15 [2] : vector<4x8x8xf32> to vector<4x8xf32>
    %12 = vector.shape_cast %11 : vector<4x8xf32> to vector<4x8x1xf32>
    %13 = arith.maximumf %10, %12 : vector<4x8x1xf32>
    %14 = arith.subf %10, %13 : vector<4x8x1xf32>
    %15 = math.exp %14 : vector<4x8x1xf32>
    %16 = vector.broadcast %13 : vector<4x8x1xf32> to vector<4x8x8xf32>
    %17 = arith.subf %9, %16 : vector<4x8x8xf32>
    %18 = math.exp %17 : vector<4x8x8xf32>
    %c0_16 = arith.constant 0 : index
    %c0_17 = arith.constant 0 : index
    %c0_18 = arith.constant 0 : index
    %19 = vector.load %arg10[%c0_16, %c0_17, %c0_18] : memref<4x8x1xf32, #tpu.memory_space<vmem>>, vector<4x8x1xf32>
    %20 = arith.mulf %15, %19 : vector<4x8x1xf32>
    %cst_19 = arith.constant dense<0.000000e+00> : vector<4x8xf32>
    %21 = vector.multi_reduction <add>, %18, %cst_19 [2] : vector<4x8x8xf32> to vector<4x8xf32>
    %22 = vector.shape_cast %21 : vector<4x8xf32> to vector<4x8x1xf32>
    %23 = arith.addf %20, %22 : vector<4x8x1xf32>
    %c0_20 = arith.constant 0 : index
    %c0_21 = arith.constant 0 : index
    %c0_22 = arith.constant 0 : index
    %24 = vector.load %arg10[%c0_20, %c0_21, %c0_22] : memref<4x8x1xf32, #tpu.memory_space<vmem>>, vector<4x8x1xf32>
    tpu.vector_store %arg10[%c0_20, %c0_21, %c0_22], %23 {strides = array<i32>} : memref<4x8x1xf32, #tpu.memory_space<vmem>>, vector<4x8x1xf32>,
    %c0_23 = arith.constant 0 : index
    %c0_24 = arith.constant 0 : index
    %c0_25 = arith.constant 0 : index
    %25 = vector.load %arg11[%c0_23, %c0_24, %c0_25] : memref<4x8x8xf32, #tpu.memory_space<vmem>>, vector<4x8x8xf32>
    %26 = vector.broadcast %15 : vector<4x8x1xf32> to vector<4x8x8xf32>
    %27 = arith.mulf %26, %25 : vector<4x8x8xf32>
    %28 = arith.truncf %18 : vector<4x8x8xf32> to vector<4x8x8xbf16>
    "tpu.trace_start"() <{level = 10 : i32, message = "hqk,hkd->hqd"}> : () -> ()
    %cst_26 = arith.constant dense<0.000000e+00> : vector<4x8x8xf32>
    %29 = tpu.matmul %28, %8, %cst_26 {dimension_numbers = #tpu.dot_dimension_numbers<[2], [1], [1], [2], [0, 0, 0, 1, 1, 2], [0], [0]>} : vector<4x8x8xbf16>, vector<4x8x8xbf16>, vector<4x8x8xf32> -> vector<4x8x8xf32>
    "tpu.trace_stop"() : () -> ()
    %30 = arith.addf %27, %29 : vector<4x8x8xf32>
    %c0_27 = arith.constant 0 : index
    %c0_28 = arith.constant 0 : index
    %c0_29 = arith.constant 0 : index
    %31 = vector.load %arg11[%c0_27, %c0_28, %c0_29] : memref<4x8x8xf32, #tpu.memory_space<vmem>>, vector<4x8x8xf32>
    tpu.vector_store %arg11[%c0_27, %c0_28, %c0_29], %30 {strides = array<i32>} : memref<4x8x8xf32, #tpu.memory_space<vmem>>, vector<4x8x8xf32>,
    %c0_30 = arith.constant 0 : index
    %c0_31 = arith.constant 0 : index
    %c0_32 = arith.constant 0 : index
    %32 = vector.load %arg9[%c0_30, %c0_31, %c0_32] : memref<4x8x1xf32, #tpu.memory_space<vmem>>, vector<4x8x1xf32>
    tpu.vector_store %arg9[%c0_30, %c0_31, %c0_32], %13 {strides = array<i32>} : memref<4x8x1xf32, #tpu.memory_space<vmem>>, vector<4x8x1xf32>,
    %c0_i32_33 = arith.constant 0 : i32
    %33 = arith.cmpi eq, %arg2, %c0_i32_33 : i32
    %34 = arith.extui %33 : i1 to i32
    %c0_i32_34 = arith.constant 0 : i32
    %35 = arith.cmpi ne, %34, %c0_i32_34 : i32
    scf.if %35 {
      %cst_35 = arith.constant 0.000000e+00 : f32
      %36 = vector.broadcast %cst_35 : f32 to vector<8x32xf32>
      %c0_i32_36 = arith.constant 0 : i32
      %37 = arith.index_cast %c0_i32_36 : i32 to index
      %c0_37 = arith.constant 0 : index
      %c0_38 = arith.constant 0 : index
      %38 = vector.load %arg10[%37, %c0_37, %c0_38] : memref<4x8x1xf32, #tpu.memory_space<vmem>>, vector<1x8x1xf32>
      %39 = vector.shape_cast %38 : vector<1x8x1xf32> to vector<8x1xf32>
      %40 = tpu.reciprocal %39 {approx = true} : vector<8x1xf32> -> vector<8x1xf32>
      %41 = arith.index_cast %c0_i32_36 : i32 to index
      %c0_39 = arith.constant 0 : index
      %c0_40 = arith.constant 0 : index
      %42 = vector.load %arg11[%41, %c0_39, %c0_40] : memref<4x8x8xf32, #tpu.memory_space<vmem>>, vector<1x8x8xf32>
      %43 = vector.shape_cast %42 : vector<1x8x8xf32> to vector<8x8xf32>
      %44 = vector.broadcast %40 : vector<8x1xf32> to vector<8x8xf32>
      %45 = arith.mulf %43, %44 : vector<8x8xf32>
      %46 = arith.truncf %45 : vector<8x8xf32> to vector<8x8xbf16>
      %47 = arith.index_cast %c0_i32_36 : i32 to index
      %c0_41 = arith.constant 0 : index
      %c0_42 = arith.constant 0 : index
      %48 = vector.load %arg6[%47, %c0_41, %c0_42] : memref<4x8x32xbf16, #tpu.memory_space<vmem>>, vector<1x8x32xbf16>
      %49 = vector.shape_cast %48 : vector<1x8x32xbf16> to vector<8x32xbf16>
      %cst_43 = arith.constant dense<0.000000e+00> : vector<8x32xf32>
      %50 = tpu.matmul %46, %49, %cst_43 {dimension_numbers = #tpu.dot_dimension_numbers<[1], [0], [0], [1], [0, 0, 1, 1], [], []>} : vector<8x8xbf16>, vector<8x32xbf16>, vector<8x32xf32> -> vector<8x32xf32>
      %51 = arith.addf %36, %50 : vector<8x32xf32>
      %c1_i32 = arith.constant 1 : i32
      %52 = arith.index_cast %c1_i32 : i32 to index
      %c0_44 = arith.constant 0 : index
      %c0_45 = arith.constant 0 : index
      %53 = vector.load %arg10[%52, %c0_44, %c0_45] : memref<4x8x1xf32, #tpu.memory_space<vmem>>, vector<1x8x1xf32>
      %54 = vector.shape_cast %53 : vector<1x8x1xf32> to vector<8x1xf32>
      %55 = tpu.reciprocal %54 {approx = true} : vector<8x1xf32> -> vector<8x1xf32>
      %56 = arith.index_cast %c1_i32 : i32 to index
      %c0_46 = arith.constant 0 : index
      %c0_47 = arith.constant 0 : index
      %57 = vector.load %arg11[%56, %c0_46, %c0_47] : memref<4x8x8xf32, #tpu.memory_space<vmem>>, vector<1x8x8xf32>
      %58 = vector.shape_cast %57 : vector<1x8x8xf32> to vector<8x8xf32>
      %59 = vector.broadcast %55 : vector<8x1xf32> to vector<8x8xf32>
      %60 = arith.mulf %58, %59 : vector<8x8xf32>
      %61 = arith.truncf %60 : vector<8x8xf32> to vector<8x8xbf16>
      %62 = arith.index_cast %c1_i32 : i32 to index
      %c0_48 = arith.constant 0 : index
      %c0_49 = arith.constant 0 : index
      %63 = vector.load %arg6[%62, %c0_48, %c0_49] : memref<4x8x32xbf16, #tpu.memory_space<vmem>>, vector<1x8x32xbf16>
      %64 = vector.shape_cast %63 : vector<1x8x32xbf16> to vector<8x32xbf16>
      %cst_50 = arith.constant dense<0.000000e+00> : vector<8x32xf32>
      %65 = tpu.matmul %61, %64, %cst_50 {dimension_numbers = #tpu.dot_dimension_numbers<[1], [0], [0], [1], [0, 0, 1, 1], [], []>} : vector<8x8xbf16>, vector<8x32xbf16>, vector<8x32xf32> -> vector<8x32xf32>
      %66 = arith.addf %51, %65 : vector<8x32xf32>
      %c2_i32 = arith.constant 2 : i32
      %67 = arith.index_cast %c2_i32 : i32 to index
      %c0_51 = arith.constant 0 : index
      %c0_52 = arith.constant 0 : index
      %68 = vector.load %arg10[%67, %c0_51, %c0_52] : memref<4x8x1xf32, #tpu.memory_space<vmem>>, vector<1x8x1xf32>
      %69 = vector.shape_cast %68 : vector<1x8x1xf32> to vector<8x1xf32>
      %70 = tpu.reciprocal %69 {approx = true} : vector<8x1xf32> -> vector<8x1xf32>
      %71 = arith.index_cast %c2_i32 : i32 to index
      %c0_53 = arith.constant 0 : index
      %c0_54 = arith.constant 0 : index
      %72 = vector.load %arg11[%71, %c0_53, %c0_54] : memref<4x8x8xf32, #tpu.memory_space<vmem>>, vector<1x8x8xf32>
      %73 = vector.shape_cast %72 : vector<1x8x8xf32> to vector<8x8xf32>
      %74 = vector.broadcast %70 : vector<8x1xf32> to vector<8x8xf32>
      %75 = arith.mulf %73, %74 : vector<8x8xf32>
      %76 = arith.truncf %75 : vector<8x8xf32> to vector<8x8xbf16>
      %77 = arith.index_cast %c2_i32 : i32 to index
      %c0_55 = arith.constant 0 : index
      %c0_56 = arith.constant 0 : index
      %78 = vector.load %arg6[%77, %c0_55, %c0_56] : memref<4x8x32xbf16, #tpu.memory_space<vmem>>, vector<1x8x32xbf16>
      %79 = vector.shape_cast %78 : vector<1x8x32xbf16> to vector<8x32xbf16>
      %cst_57 = arith.constant dense<0.000000e+00> : vector<8x32xf32>
      %80 = tpu.matmul %76, %79, %cst_57 {dimension_numbers = #tpu.dot_dimension_numbers<[1], [0], [0], [1], [0, 0, 1, 1], [], []>} : vector<8x8xbf16>, vector<8x32xbf16>, vector<8x32xf32> -> vector<8x32xf32>
      %81 = arith.addf %66, %80 : vector<8x32xf32>
      %c3_i32 = arith.constant 3 : i32
      %82 = arith.index_cast %c3_i32 : i32 to index
      %c0_58 = arith.constant 0 : index
      %c0_59 = arith.constant 0 : index
      %83 = vector.load %arg10[%82, %c0_58, %c0_59] : memref<4x8x1xf32, #tpu.memory_space<vmem>>, vector<1x8x1xf32>
      %84 = vector.shape_cast %83 : vector<1x8x1xf32> to vector<8x1xf32>
      %85 = tpu.reciprocal %84 {approx = true} : vector<8x1xf32> -> vector<8x1xf32>
      %86 = arith.index_cast %c3_i32 : i32 to index
      %c0_60 = arith.constant 0 : index
      %c0_61 = arith.constant 0 : index
      %87 = vector.load %arg11[%86, %c0_60, %c0_61] : memref<4x8x8xf32, #tpu.memory_space<vmem>>, vector<1x8x8xf32>
      %88 = vector.shape_cast %87 : vector<1x8x8xf32> to vector<8x8xf32>
      %89 = vector.broadcast %85 : vector<8x1xf32> to vector<8x8xf32>
      %90 = arith.mulf %88, %89 : vector<8x8xf32>
      %91 = arith.truncf %90 : vector<8x8xf32> to vector<8x8xbf16>
      %92 = arith.index_cast %c3_i32 : i32 to index
      %c0_62 = arith.constant 0 : index
      %c0_63 = arith.constant 0 : index
      %93 = vector.load %arg6[%92, %c0_62, %c0_63] : memref<4x8x32xbf16, #tpu.memory_space<vmem>>, vector<1x8x32xbf16>
      %94 = vector.shape_cast %93 : vector<1x8x32xbf16> to vector<8x32xbf16>
      %cst_64 = arith.constant dense<0.000000e+00> : vector<8x32xf32>
      %95 = tpu.matmul %91, %94, %cst_64 {dimension_numbers = #tpu.dot_dimension_numbers<[1], [0], [0], [1], [0, 0, 1, 1], [], []>} : vector<8x8xbf16>, vector<8x32xbf16>, vector<8x32xf32> -> vector<8x32xf32>
      %96 = arith.addf %81, %95 : vector<8x32xf32>
      %c4_i32 = arith.constant 4 : i32
      %c0_65 = arith.constant 0 : index
      %c0_66 = arith.constant 0 : index
      %97 = vector.load %arg7[%c0_65, %c0_66] : memref<1x32xf32, #tpu.memory_space<vmem>>, vector<1x32xf32>
      %98 = vector.broadcast %97 : vector<1x32xf32> to vector<8x32xf32>
      %99 = arith.addf %96, %98 : vector<8x32xf32>
      %c0_67 = arith.constant 0 : index
      %c0_68 = arith.constant 0 : index
      %c0_69 = arith.constant 0 : index
      %100 = vector.load %arg8[%c0_67, %c0_68, %c0_69] : memref<1x8x32xf32, #tpu.memory_space<vmem>>, vector<1x8x32xf32>
      %101 = vector.shape_cast %100 : vector<1x8x32xf32> to vector<8x32xf32>
      %102 = vector.shape_cast %99 : vector<8x32xf32> to vector<1x8x32xf32>
      tpu.vector_store %arg8[%c0_67, %c0_68, %c0_69], %102 {strides = array<i32>} : memref<1x8x32xf32, #tpu.memory_space<vmem>>, vector<1x8x32xf32>,
    } else {
    }
    return
  }
  func.func @transform_0(%arg0: i32, %arg1: i32, %arg2: i32) -> (i32, i32, i32, i32) {
    %c0_i32 = arith.constant 0 : i32
    %c0_i32_0 = arith.constant 0 : i32
    %c0_i32_1 = arith.constant 0 : i32
    return %arg0, %c0_i32, %arg1, %c0_i32_0 : i32, i32, i32, i32
  }
  func.func @transform_1(%arg0: i32, %arg1: i32, %arg2: i32) -> (i32, i32, i32, i32) {
    %c0_i32 = arith.constant 0 : i32
    %c0_i32_0 = arith.constant 0 : i32
    %c0_i32_1 = arith.constant 0 : i32
    return %arg0, %c0_i32, %arg2, %c0_i32_0 : i32, i32, i32, i32
  }
  func.func @transform_2(%arg0: i32, %arg1: i32, %arg2: i32) -> (i32, i32, i32, i32) {
    %c0_i32 = arith.constant 0 : i32
    %c0_i32_0 = arith.constant 0 : i32
    %c0_i32_1 = arith.constant 0 : i32
    return %arg0, %c0_i32, %arg2, %c0_i32_0 : i32, i32, i32, i32
  }
  func.func @transform_3(%arg0: i32, %arg1: i32, %arg2: i32) -> (i32, i32, i32) {
    %c0_i32 = arith.constant 0 : i32
    %c0_i32_0 = arith.constant 0 : i32
    %c0_i32_1 = arith.constant 0 : i32
    %c0_i32_2 = arith.constant 0 : i32
    return %c0_i32, %c0_i32_0, %c0_i32_1 : i32, i32, i32
  }
  func.func @transform_4(%arg0: i32, %arg1: i32, %arg2: i32) -> (i32, i32) {
    %c0_i32 = arith.constant 0 : i32
    %c0_i32_0 = arith.constant 0 : i32
    %c0_i32_1 = arith.constant 0 : i32
    return %c0_i32, %c0_i32_0 : i32, i32
  }
  func.func @transform_5(%arg0: i32, %arg1: i32, %arg2: i32) -> (i32, i32, i32) {
    %c0_i32 = arith.constant 0 : i32
    %c0_i32_0 = arith.constant 0 : i32
    return %arg0, %arg1, %c0_i32 : i32, i32, i32
  }
}

</mosaic_0001>

<bundles_post_ra>
// kernel: tpu_custom_call.1
= control target key start
LH: loop header
LB: loop body
LE: loop exit
PB: predicated region body
PF: predicated region fallthrough
CT: control target
= control target key end

     0   :  { %s2297_s0 = inlined_call_operand.hbm [shape: bf16[2,4,8,8], index: 0, kind: input, shape index: {}]   ;;  %s2298_s1 = inlined_call_operand.hbm [shape: bf16[2,4,8,8], index: 1, kind: input, shape index: {}]   ;;  %s2299_s2 = inlined_call_operand.hbm [shape: bf16[2,4,8,8], index: 2, kind: input, shape index: {}]   ;;  %s2300_s3 = inlined_call_operand.hbm [shape: bf16[4,8,32], index: 3, kind: input, shape index: {}]   ;;  %s2301_s4 = inlined_call_operand.vmem [shape: f32[1,32], index: 4, kind: input, shape index: {}]   ;;  %s2302_s5 = inlined_call_operand.hbm [shape: f32[2,8,32], index: 5, kind: output, shape index: {}]  }
   0x1   :  { %2322 = sst [smem:[#allocation23_spill]] %s2297_s0 }
   0x2   :  { %2323 = sst [smem:[#allocation24_spill]] %s2298_s1 }
   0x3   :  { %10 = vsyncpa [#allocation6], 0 }
   0x4   :  { %12 = vsyncpa [#allocation6 + $0x1], 0 }
   0x5   :  { %13 = vsyncpa [#allocation9], 0 }
   0x6   :  { %15 = vsyncpa [#allocation9 + $0x1], 0 }
   0x7   :  { %16 = vsyncpa [#allocation12], 0 }
   0x8   :  { %17 = vsyncpa [#allocation7], 0 }
   0x9   :  { %19 = vsyncpa [#allocation7 + $0x1], 0  ;;  %s1813_s18 = smov 0   ;;  %s1815_s19 = smov 0  }
   0xa   :  { %s1817_s20 = smov 0   ;;  %s1819_s21 = smov 0  }
   0xb   :  { %s1821_s22 = smov 0   ;;  %s1823_s23 = smov 0  }
   0xc LB: > { %2324 = sst [smem:[#allocation18_spill]] %s1758_s20  ;;  %s44_s24 = sadd.s32 1, %s1766_s22  ;;  %s1770_s23 = sphi %s1823_s23, %s25_s23   ;;  %s1766_s22 = sphi %s1821_s22, %s2356_s22   ;;  %s1762_s21 = sphi %s1819_s21, %s2355_s21   ;;  %s1758_s20 = sphi %s1817_s20, %s2354_s20   ;;  %s1754_s19 = sphi %s1815_s19, %s2358_s19   ;;  %s1750_s18 = sphi %s1813_s18, %s2357_s18  }
   0xd   : > { %2325 = sst [smem:[#allocation19_spill]] %s1766_s22  ;;  %s53_s25 = sadd.s32 1, %s1758_s20 }
   0xe   : > { %2326 = sst [smem:[#allocation20_spill]] %s1770_s23  ;;  %p46_p0 = scmp.ge.s32.totalorder %s44_s24, 2 }
   0xf   : > { %p2303_p1 = scmp.ne.s32.totalorder %s1758_s20, %s1754_s19  ;;  %p61_p2 = scmp.eq.s32.totalorder %s1770_s23, 0 }
  0x10   : > { %s2360_s24 = smov (%p46_p0, %s44_s24), 0  ;;  %p1478_p6 = scmp.lt.s32.totalorder %s1770_s23, 2 }
  0x11   : > { %2327 = sst [smem:[#allocation21_spill]] %s2360_s24  ;;  %p62_p3 = por %p61_p2, %p2303_p1 }
  0x12   : > { %s48_s26 = ssub.s32 %s1766_s22, %s2360_s24  ;;  %s2308_s27 = sand.u32 1, %s1758_s20  }
  0x13   : > { %p51_p5 = scmp.eq.s32.totalorder %s48_s26, 0  ;;  %s1859_s28 = sshll.u32 %s1766_s22, 8 }
  0x14   : > { %s1866_s30 = sshll.u32 %s2308_s27, 4  ;;  %p1868_p7 = pnand %p1478_p6, %p62_p3 }
  0x15   : > { %s1862_s29 = scalar_select %p51_p5, %s1758_s20, %s53_s25  }
  0x16   : > { %s2329_s6 = scalar_select %p1868_p7, 1, 0 }
  0x17   : > { %2328 = sst [smem:[#allocation22_spill]] %s1862_s29  ;;  %s254_s7 = sand.u32 1, %s1770_s23  }
  0x18   : > { %s2330_s1 = sld [smem:[#allocation24_spill]]  ;;  %s258_s11 = scalar_lea.vmem [#allocation8], %s1866_s30 }
  0x19   : > { %s266_s12 = sshll.u32 %s258_s11, 4  ;;  %s1882_s13 = scalar_lea.sflag [#allocation9], %s254_s7  ;;  %s1880_s12 = int_to_ptr.vmem [resolvable:$true] %s266_s12 }
  0x1a   : > { %p1888_p9 = pneg %p1868_p7 }
  0x1c   : > { %s2331_s15 = scalar_select %p1888_p9, 1, 0 }
  0x1e   : > { %s1877_s10 = scalar_lea.hbm %s2330_s1, %s1859_s28  ;;  %s1567_s25 = scalar_lea.hbm %s2330_s1, 512 }
  0x1f   : > { %s1562_s14 = scalar_lea.hbm %s1877_s10, 256  ;;  %p1568_p12 = scmp.lt.u32.totalorder %s1877_s10, %s2330_s1 }
  0x20   : > { %p1563_p8 = scmp.ne.s32.totalorder %s1877_s10, %s1562_s14  ;;  %p1569_p13 = scmp.lt.u32.totalorder %s1567_s25, %s1562_s14 }
  0x21   : > { %p1571_p2 = scmp.lt.u32.totalorder %s1562_s14, %s1877_s10 }
  0x22   : > { %p1565_p10 = pnand %p1888_p9, %p1563_p8  ;;  %p1570_p0 = por %p1569_p13, %p1568_p12 }
  0x24   : > { %p1566_p11 = pneg %p1565_p10  ;;  %p1572_p3 = por %p1571_p2, %p1570_p0 }
  0x26   : > { %p1573_p5 = pnand %p1572_p3, %p1566_p11 }
  0x28   : > { %1576 = shalt.err (!%p1573_p5)
}
  0x29   : > { %s1577_s7 = scalar_lea.vmem %s1880_s12, 256  ;;  %s1772_s9 = smov [#allocation8]  }
  0x2a   : > { %p1578_p6 = scmp.ne.s32.totalorder %s1880_s12, %s1577_s7  ;;  %s1582_s11 = sshll.u32 %s1772_s9, 4  ;;  %s1583_s11 = int_to_ptr.vmem [resolvable:$false] %s1582_s11 }
  0x2b   : > { %s1584_s16 = scalar_lea.vmem %s1583_s11, 512  ;;  %p1585_p4 = scmp.lt.s32.totalorder %s1880_s12, %s1583_s11 }
  0x2c   : > { %p1580_p8 = pnand %p1578_p6, %p1888_p9  ;;  %p1586_p1 = scmp.lt.s32.totalorder %s1584_s16, %s1577_s7 }
  0x2e   : > { %p1581_p10 = pneg %p1580_p8  ;;  %p1587_p12 = por %p1586_p1, %p1585_p4 }
  0x30   : > { %p1588_p13 = pnand %p1587_p12, %p1581_p10 }
  0x32   : > { %1591 = shalt.err (!%p1588_p13)
}
  0x33   : > { %s2304_s14 = smov 64   ;;  %s2306_s17 = smov 4  }
  0x34   : > { %1469 = dma.hbm_to_vmem [thread:$0]  (!%p1868_p7), %s1877_s10, 256, %s1880_s12, %s1882_s13, %s2304_s14, %s2304_s14, %s2306_s17  }
  0x35   : > { %s1916_s25 = sadd.s32 4294967295, %s1770_s23   ;;  %s1312_s26 = sadd.s32 4294967294, %s1770_s23  }
  0x36   : > { %p66_p1 = scmp.ne.s32.totalorder %s1754_s19, %s1750_s18  ;;  %p2313_p4 = scmp.eq.s32.totalorder %s1916_s25, 0 }
  0x37   : > { %p190_p11 = scmp.eq.s32.totalorder %s1916_s25, 1  ;;  %p196_p0 = scmp.eq.s32.totalorder %s1312_s26, 1 }
  0x38   : > { %p1313_p2 = scmp.ge.s32.totalorder %s1770_s23, 1  ;;  %p1926_p3 = por %p2313_p4, %p66_p1 }
  0x39   : > { %p2333_p5 = scmp.ne.s32.totalorder %s1758_s20, %s1754_s19  ;;  %p1937_p8 = por %p196_p0, %p66_p1 }
  0x3a   : > { %s2332_s8 = scalar_select %p1926_p3, 1, 0 }
  0x3b   : > { %p1933_p6 = por %p190_p11, %p2333_p5  ;;  %p203_p10 = scmp.lt.s32.totalorder %s1770_s23, 3 }
  0x3c   : > { %s2335_s12 = scalar_select %p1937_p8, 1, 0 }
  0x3d   : > { %s2334_s10 = scalar_select %p1933_p6, 1, 0 }
  0x3e   : > { %p1942_p12 = pnand %p1313_p2, %p203_p10  ;;  %s1775_s9 = smov [#allocation11]  }
  0x3f   : > { %s215_s11 = sshll.u32 %s1775_s9, 4  ;;  %s2337_s0 = sld [smem:[#allocation23_spill]]  ;;  %s1946_s11 = int_to_ptr.vmem [resolvable:$true] %s215_s11 }
  0x40   : > { %s2336_s7 = scalar_select %p1942_p12, 1, 0 }
  0x41   : > { %p1459_p13 = pneg %p1942_p12  ;;  %s236_s17 = scalar_lea.vmem [#allocation5], %s1866_s30 }
  0x42   : > { %s244_s27 = sshll.u32 %s236_s17, 4  ;;  %s2339_s9 = sand.u32 1, %s1758_s20   ;;  %s1963_s27 = int_to_ptr.vmem [resolvable:$true] %s244_s27 }
  0x43   : > { %p1959_p1 = pnand %p1459_p13, %p2313_p4  ;;  %s1967_s24 = scalar_lea.sflag [#allocation6], %s2339_s9 }
  0x45   : > { %s1954_s14 = scalar_lea.hbm %s2337_s0, %s1859_s28  ;;  %s1597_s29 = scalar_lea.hbm %s2337_s0, 512 }
  0x46   : > { %s2338_s1 = scalar_select %p1959_p1, 1, 0 }
  0x47   : > { %s1592_s22 = scalar_lea.hbm %s1954_s14, 256  ;;  %p1598_p5 = scmp.lt.u32.totalorder %s1954_s14, %s2337_s0 }
  0x48   : > { %p1593_p11 = scmp.ne.s32.totalorder %s1954_s14, %s1592_s22  ;;  %p1599_p10 = scmp.lt.u32.totalorder %s1597_s29, %s1592_s22 }
  0x49   : > { %p1601_p4 = scmp.lt.u32.totalorder %s1592_s22, %s1954_s14 }
  0x4a   : > { %p1595_p0 = pnand %p1593_p11, %p1888_p9  ;;  %p1600_p13 = por %p1599_p10, %p1598_p5 }
  0x4c   : > { %p1596_p2 = pneg %p1595_p0  ;;  %p1602_p8 = por %p1601_p4, %p1600_p13 }
  0x4e   : > { %p1603_p6 = pnand %p1602_p8, %p1596_p2 }
  0x50   : > { %1606 = shalt.err (!%p1603_p6)
}
  0x51   : > { %s1607_s9 = scalar_lea.vmem %s1963_s27, 256  ;;  %s1776_s16 = smov [#allocation5]  }
  0x52   : > { %p1608_p11 = scmp.ne.s32.totalorder %s1963_s27, %s1607_s9  ;;  %s1612_s26 = sshll.u32 %s1776_s16, 4  ;;  %s1613_s26 = int_to_ptr.vmem [resolvable:$false] %s1612_s26 }
  0x53   : > { %s1614_s23 = scalar_lea.vmem %s1613_s26, 512  ;;  %p1615_p12 = scmp.lt.s32.totalorder %s1963_s27, %s1613_s26 }
  0x54   : > { %p1610_p0 = pnand %p1608_p11, %p1888_p9  ;;  %p1616_p1 = scmp.lt.s32.totalorder %s1614_s23, %s1607_s9 }
  0x56   : > { %p1611_p3 = pneg %p1610_p0  ;;  %p1617_p5 = por %p1616_p1, %p1615_p12 }
  0x58   : > { %p1618_p10 = pnand %p1617_p5, %p1611_p3 }
  0x5a   : > { %1621 = shalt.err (!%p1618_p10)
}
  0x5b   : > { %s2340_s22 = smov 4   ;;  %s2341_s29 = smov 64  }
  0x5c   : > { %1466 = dma.hbm_to_vmem [thread:$0]  (!%p1868_p7), %s1954_s14, 256, %s1963_s27, %s1967_s24, %s2341_s29, %s2341_s29, %s2340_s22  }
  0x5d   : > { %s1622_s16 = scalar_lea.hbm %s2300_s3, 256  ;;  %p2342_p3 = scmp.ne.s32.totalorder %s2338_s1, 0 }
  0x5e   : > { %p1623_p4 = scmp.ne.s32.totalorder %s2300_s3, %s1622_s16  ;;  %p1629_p1 = scmp.lt.u32.totalorder %s1622_s16, %s2300_s3 }
  0x5f   : > { %p1624_p6 = pneg %p2342_p3 }
  0x61   : > { %p1625_p8 = pnand %p1624_p6, %p1623_p4 }
  0x63   : > { %p1626_p12 = pneg %p1625_p8 }
  0x65   : > { %p1631_p2 = pnand %p1629_p1, %p1626_p12 }
  0x67   : > { %1634 = shalt.err (!%p1631_p2)
}
  0x68   : > { %s1635_s24 = scalar_lea.vmem %s1946_s11, 256  ;;  %p1643_p5 = scmp.lt.s32.totalorder %s1946_s11, %s1946_s11 }
  0x69   : > { %p1636_p13 = scmp.ne.s32.totalorder %s1946_s11, %s1635_s24  ;;  %p1644_p10 = scmp.lt.s32.totalorder %s1635_s24, %s1635_s24 }
  0x6b   : > { %p1638_p11 = pnand %p1636_p13, %p1624_p6  ;;  %p1645_p7 = por %p1644_p10, %p1643_p5 }
  0x6d   : > { %p1639_p0 = pneg %p1638_p11 }
  0x6f   : > { %p1646_p9 = pnand %p1645_p7, %p1639_p0 }
  0x71   : > { %1649 = shalt.err (!%p1646_p9)
}
  0x72   : > { %1462 = dma.hbm_to_vmem [thread:$0]  (!%p2342_p3), %s2300_s3, 256, %s1946_s11, [#allocation12], %s2341_s29, %s2341_s29, %s2340_s22  }
  0x73   : > { %s2022_s17 = scalar_lea.hbm %s2299_s2, %s1859_s28  ;;  %s280_s1 = scalar_lea.vmem [#allocation10], %s1866_s30 }
  0x74   : > { %s288_s16 = sshll.u32 %s280_s1, 4  ;;  %s1650_s26 = scalar_lea.hbm %s2022_s17, 256  ;;  %s2025_s16 = int_to_ptr.vmem [resolvable:$true] %s288_s16 }
  0x75   : > { %p1651_p7 = scmp.ne.s32.totalorder %s2022_s17, %s1650_s26  ;;  %p2343_p9 = scmp.ne.s32.totalorder %s2331_s15, 0 }
  0x76   : > { %s1655_s23 = scalar_lea.hbm %s2299_s2, 512  ;;  %p1656_p3 = scmp.lt.u32.totalorder %s2022_s17, %s2299_s2 }
  0x77   : > { %p1653_p4 = pnand %p1651_p7, %p2343_p9  ;;  %p1657_p8 = scmp.lt.u32.totalorder %s1655_s23, %s1650_s26 }
  0x78   : > { %p1659_p1 = scmp.lt.u32.totalorder %s1650_s26, %s2022_s17 }
  0x79   : > { %p1654_p6 = pneg %p1653_p4  ;;  %p1658_p12 = por %p1657_p8, %p1656_p3 }
  0x7b   : > { %p1660_p2 = por %p1659_p1, %p1658_p12 }
  0x7d   : > { %p1661_p13 = pnand %p1660_p2, %p1654_p6 }
  0x7f   : > { %1664 = shalt.err (!%p1661_p13)
}
  0x80   : > { %s1665_s30 = scalar_lea.vmem %s2025_s16, 256  ;;  %s1777_s0 = smov [#allocation10]  }
  0x81   : > { %p1666_p11 = scmp.ne.s32.totalorder %s2025_s16, %s1665_s30  ;;  %s1670_s20 = sshll.u32 %s1777_s0, 4  ;;  %s1671_s20 = int_to_ptr.vmem [resolvable:$false] %s1670_s20 }
  0x82   : > { %s1672_s27 = scalar_lea.vmem %s1671_s20, 512  ;;  %p1673_p10 = scmp.lt.s32.totalorder %s2025_s16, %s1671_s20 }
  0x83   : > { %p1668_p0 = pnand %p1666_p11, %p2343_p9  ;;  %p1674_p7 = scmp.lt.s32.totalorder %s1672_s27, %s1665_s30 }
  0x85   : > { %p1669_p5 = pneg %p1668_p0  ;;  %p1675_p4 = por %p1674_p7, %p1673_p10 }
  0x87   : > { %p1676_p3 = pnand %p1675_p4, %p1669_p5 }
  0x89   : > { %1679 = shalt.err (!%p1676_p3)
}
  0x8a   : > { %p2344_p6 = scmp.ne.s32.totalorder %s2329_s6, 0  ;;  %p2345_p9 = scmp.ne.s32.totalorder %s2336_s7, 0 }
  0x8b   : > { %s2055_s15 = sand.u32 (!%p2345_p9), 1, %s1754_s19   ;;  %p2346_p8 = scmp.ne.s32.totalorder (!%p2345_p9), %s2332_s8, 0 }
  0x8c   : > { %1472 = dma.hbm_to_vmem [thread:$0]  (!%p2344_p6), %s2022_s17, 256, %s2025_s16, %s1882_s13, %s2341_s29, %s2341_s29, %s2340_s22  }
  0x8d   : > { %300 = sbr.rel (%p2345_p9) target bundleno = 1205 (0x4b5), region = 40  ;;  %s1326_s14 = sshll.u32 (!%p2345_p9), %s2055_s15, 4 }
  0x8e   : > { %s303_s1 = scalar_lea.sflag (!%p2345_p9), [#allocation6], %s2055_s15  ;;  %s2059_s26 = scalar_lea.vmem (!%p2345_p9), [#allocation5], %s1326_s14 }
  0x94   : > { %1733 = dma.done.wait (%p2346_p8), %s303_s1, 256  }
  0x95   : > { %1735 = vsyncadd (%p2346_p8), %s303_s1, 4294967040  ;;  %s311_s6 = sand.u32 1, %s1916_s25   ;;  %s315_s7 = scalar_lea.vmem [#allocation8], %s1326_s14 }
  0x96   : > { %s312_s13 = scalar_lea.sflag [#allocation9], %s311_s6 }
  0x97   : > { %1737 = dma.done.wait (%p2346_p8), %s312_s13, 512  }
  0x98   : > { %1739 = vsyncadd (%p2346_p8), %s312_s13, 4294966784  ;;  %s2070_s22 = scalar_lea.vmem [#allocation10], %s1326_s14  ;;  %p2347_p12 = scmp.eq.s32.totalorder %s1916_s25, 0 }
  0x9a   : > { %1741 = dma.done.wait (%p2347_p12), [#allocation12], 256   ;;  %p2348_p1 = pmov %p2347_p12 }
  0x9b   : > { %vm379_vm0 = vcmask 64512   ;;  %v1778_v0 = vmov 0.0   ;;  %vm1779_vm1 = vmmov 0   ;;  %v388_v1 = vld [vmem:[%s315_s7] sm:$0xf]  ;;  %vm370_vm2 = vcmask 7168  }
  0x9c   : > { %1743 = vsyncadd (%p2348_p1), [#allocation12], 4294967040  ;;  %1375 = vmatprep.subr.bf16.mxu0 %v1778_v0  ;;  %380 = vst.msk [vmem:[#allocation4] sm:$0xff] %vm379_vm0, %v1778_v0  ;;  %1381 = vmatprep.subr.bf16.mxu1 %v1778_v0  ;;  %v389_v2 = vld [vmem:[%s315_s7 + $0x4] sm:$0xf]  ;;  %v401_v3 = vsel %vm379_vm0, %v388_v1, 0 }
  0x9d   : > { %381 = vst.msk [vmem:[#allocation4 + $0x8] sm:$0xff] %vm379_vm0, %v1778_v0  ;;  %382 = vst.msk [vmem:[#allocation4 + $0x10] sm:$0xff] %vm379_vm0, %v1778_v0  ;;  %1377 = vmatprep.mubr.msk.bf16.mxu0 %vm1779_vm1, %v1778_v0  ;;  %1383 = vmatprep.mubr.msk.bf16.mxu1 %vm1779_vm1, %v1778_v0  ;;  %v447_v4 = vsel %vm379_vm0, %v389_v2, 0  ;;  %v390_v5 = vld [vmem:[%s315_s7 + $0x8] sm:$0xf]  ;;  %v1780_v13 = vmov -inf  }
  0x9e   : > { %383 = vst.msk [vmem:[#allocation4 + $0x18] sm:$0xff] %vm379_vm0, %v1778_v0  ;;  %1376 = vmatpush3.bf16.xpose.msra.mxu0 %v401_v3  ;;  %1382 = vmatpush3.bf16.xpose.msra.mxu1 %v447_v4  ;;  %v391_v6 = vld [vmem:[%s315_s7 + $0xc] sm:$0xf]  ;;  %v384_v7 = vld [vmem:[%s2059_s26] sm:$0xf]  ;;  %v493_v9 = vsel %vm379_vm0, %v390_v5, 0 }
  0x9f   : > { %1387 = vmatprep.subr.bf16.mxu0 %v1778_v0  ;;  %1393 = vmatprep.subr.bf16.mxu1 %v1778_v0  ;;  %v385_v8 = vld [vmem:[%s2059_s26 + $0x4] sm:$0xf]  ;;  %v539_v10 = vsel %vm379_vm0, %v391_v6, 0  ;;  %v386_v11 = vld [vmem:[%s2059_s26 + $0x8] sm:$0xf]  ;;  %371 = vst.msk [vmem:[#allocation2] sm:$0xff] %vm370_vm2, %v1780_v13 }
  0xa0   : > { %v387_v12 = vld [vmem:[%s2059_s26 + $0xc] sm:$0xf]  ;;  %372 = vst.msk [vmem:[#allocation2 + $0x8] sm:$0xff] %vm370_vm2, %v1780_v13  ;;  %373 = vst.msk [vmem:[#allocation2 + $0x10] sm:$0xff] %vm370_vm2, %v1780_v13  ;;  %v1781_v34 = vmov 0   ;;  %vm709_vm3 = vcmask 1043456  }
  0xa1   : > { %374 = vst.msk [vmem:[#allocation2 + $0x18] sm:$0xff] %vm370_vm2, %v1780_v13  ;;  %375 = vst.msk [vmem:[#allocation3] sm:$0xff] %vm370_vm2, %v1778_v0  ;;  %1536 = vset.pattern.permute.xlu0 %v1781_v34  ;;  %1537 = vset.pattern.permute.xlu1 %v1781_v34  ;;  %v392_v51 = vld [vmem:[%s2070_s22] sm:$0xf]  ;;  %v393_v53 = vld [vmem:[%s2070_s22 + $0x4] sm:$0xf] }
  0xa2   : > { %376 = vst.msk [vmem:[#allocation3 + $0x8] sm:$0xff] %vm370_vm2, %v1778_v0  ;;  %377 = vst.msk [vmem:[#allocation3 + $0x10] sm:$0xff] %vm370_vm2, %v1778_v0  ;;  %v711_v52 = vsel %vm709_vm3, %v392_v51, 0  ;;  %v757_v54 = vsel %vm709_vm3, %v393_v53, 0  ;;  %v394_v3 = vld [vmem:[%s2070_s22 + $0x8] sm:$0xf] }
  0xa3   : > { %378 = vst.msk [vmem:[#allocation3 + $0x18] sm:$0xff] %vm370_vm2, %v1778_v0  ;;  %v930_v51 = vld [vmem:[#allocation11 + $0x4] sm:$0xf]  ;;  %s1330_s25 = sshll.u32 %s2055_s15, 3  ;;  %s1345_s17 = sshll.u32 %s1762_s21, 7  ;;  %vm1153_vm4 = vcmask 261120  }
  0xa4   : > { %v935_v53 = vsel %vm709_vm3, %v930_v51, 0  ;;  %s364_s16 = scalar_lea.vmem [#allocation13], %s1330_s25  ;;  %s2248_s24 = scalar_lea.hbm %s2302_s5, %s1345_s17 }
  0xa5   : > { %1378 = vmatmul.mubr.msk.bf16.vlgmr.msra.gmra.mrb[0].mxu0 %vm379_vm0, %v384_v7  ;;  %1384 = vmatmul.mubr.msk.bf16.vlgmr.msra.gmra.mrb[0].mxu1 %vm379_vm0, %v385_v8  ;;  %v803_v8 = vsel %vm709_vm3, %v394_v3, 0  ;;  %s1170_s9 = sshll.u32 %s364_s16, 4  ;;  %s1156_s28 = scalar_lea.sflag [#allocation7], %s2055_s15  ;;  %s2250_s9 = int_to_ptr.vmem [resolvable:$true] %s1170_s9 }
  0xa6   : > { %1388 = vmatpush3.bf16.xpose.msra.mxu0 %v493_v9  ;;  %1394 = vmatpush3.bf16.xpose.msra.mxu1 %v539_v10  ;;  %v2136_v35 = vld [vmem:[#allocation2] sm:$0xff]  ;;  %v395_v9 = vld [vmem:[%s2070_s22 + $0xc] sm:$0xf]  ;;  %s1680_s21 = scalar_lea.vmem %s2250_s9, 128  ;;  %p2349_p13 = scmp.ne.s32.totalorder %s2334_s10, 0 }
  0xa7   : > { %1389 = vmatprep.mubr.msk.bf16.mxu0 %vm1779_vm1, %v1778_v0  ;;  %1395 = vmatprep.mubr.msk.bf16.mxu1 %vm1779_vm1, %v1778_v0  ;;  %v2141_v38 = vld [vmem:[#allocation2 + $0x8] sm:$0xff]  ;;  %v2151_v42 = vld [vmem:[#allocation2 + $0x10] sm:$0xff]  ;;  %v849_v13 = vsel %vm709_vm3, %v395_v9, 0  ;;  %p1681_p2 = scmp.ne.s32.totalorder %s2250_s9, %s1680_s21  ;;  %s1782_s30 = smov [#allocation13]  }
  0xa8   : > { %1399 = vmatprep.subr.bf16.mxu0 %v1778_v0  ;;  %1405 = vmatprep.subr.bf16.mxu1 %v1778_v0  ;;  %v2161_v46 = vld [vmem:[#allocation2 + $0x18] sm:$0xff]  ;;  %s1684_s0 = sshll.u32 %s1782_s30, 4  ;;  %s1685_s0 = int_to_ptr.vmem [resolvable:$false] %s1684_s0 }
  0xa9   : > { %p1682_p11 = pnand %p1681_p2, %p2349_p13  ;;  %s1686_s20 = scalar_lea.vmem %s1685_s0, 256 }
  0xaa   : > { %p1687_p5 = scmp.lt.s32.totalorder %s2250_s9, %s1685_s0  ;;  %p1688_p10 = scmp.lt.s32.totalorder %s1686_s20, %s1680_s21 }
  0xab   : > { %p1683_p0 = pneg %p1682_p11 }
  0xac   : > { %p1689_p7 = por %p1688_p10, %p1687_p5 }
  0xad   : > { %1390 = vmatmul.mubr.msk.bf16.vlgmr.msra.gmra.mrb[4].mxu0 %vm379_vm0, %v386_v11  ;;  %1396 = vmatmul.mubr.msk.bf16.vlgmr.msra.gmra.mrb[4].mxu1 %vm379_vm0, %v387_v12 }
  0xae   : > { %1401 = vmatprep.mubr.msk.bf16.mxu0 %vm1779_vm1, %v1778_v0  ;;  %1407 = vmatprep.mubr.msk.bf16.mxu1 %vm1779_vm1, %v1778_v0  ;;  %p1690_p4 = pnand %p1689_p7, %p1683_p0 }
  0xaf   : > { %1400 = vmatpush3.bf16.msra.mxu0 %v711_v52  ;;  %1406 = vmatpush3.bf16.msra.mxu1 %v757_v54 }
  0xb0   : > { %1411 = vmatprep.subr.bf16.mxu0 %v1778_v0  ;;  %1417 = vmatprep.subr.bf16.mxu1 %v1778_v0 }
 0x178   : > { %v437_v14 = vpop.f32.mrb[0].mxu0  ;;  %v2126_v15 = vpop.f32.mrb[0].mxu1 }
 0x179   : > { %v1379_v16 = vpop.f32.mrb[1].mxu0  ;;  %v1385_v17 = vpop.f32.mrb[1].mxu1  ;;  %v585_v18 = vsel %vm379_vm0, %v437_v14, -inf  ;;  %v588_v23 = vsel %vm379_vm0, %v2126_v15, -inf }
 0x17a   : > { %586 = vmax.xlane.f32.xlu0 %v585_v18  ;;  %v440_v19 = vpop.f32.mrb[2].mxu0  ;;  %v486_v20 = vpop.f32.mrb[2].mxu1 }
 0x17b   : > { %v1380_v21 = vpop.f32.mrb[3].mxu0  ;;  %v1386_v22 = vpop.f32.mrb[3].mxu1 }
 0x17e   : > { %589 = vmax.xlane.f32.xlu0 %v588_v23 }
 0x180   : > { %v529_v24 = vpop.f32.mrb[4].mxu0  ;;  %v2131_v25 = vpop.f32.mrb[4].mxu1 }
 0x181   : > { %v1391_v26 = vpop.f32.mrb[5].mxu0  ;;  %v591_v27 = vsel %vm379_vm0, %v529_v24, -inf  ;;  %v1397_v28 = vpop.f32.mrb[5].mxu1  ;;  %v594_v33 = vsel %vm379_vm0, %v2131_v25, -inf }
 0x182   : > { %592 = vmax.xlane.f32.xlu1 %v591_v27  ;;  %v532_v29 = vpop.f32.mrb[6].mxu0  ;;  %v578_v30 = vpop.f32.mrb[6].mxu1  ;;  %v645_v28 = vld [vmem:[#allocation3] sm:$0xff] }
 0x183   : > { %v1392_v31 = vpop.f32.mrb[7].mxu0  ;;  %v1398_v32 = vpop.f32.mrb[7].mxu1 }
 0x184   : > { %v646_v31 = vld [vmem:[#allocation3 + $0x8] sm:$0xff] }
 0x186   : > { %595 = vmax.xlane.f32.xlu1 %v594_v33 }
 0x207   : > { %v587_v36 = vpop.xlane.xlu0 %586 }
 0x208   : > { %v2139_v37 = vmax.f32 %v2136_v35, %v587_v36 }
 0x20a   : > { %v601_v39 = vsub.f32 %v2136_v35, %v2139_v37  ;;  %899 = vst.msk [vmem:[#allocation2] sm:$0xff] %vm370_vm2, %v2139_v37  ;;  %615 = vperm.xlu0 %1536, %v2139_v37   ;;  %v647_v35 = vld [vmem:[#allocation3 + $0x10] sm:$0xff] }
 0x20b   : > { %v590_v40 = vpop.xlane.xlu0 %589 }
 0x20c   : > { %v2149_v41 = vmax.f32 %v2141_v38, %v590_v40 }
 0x20e   : > { %v602_v43 = vsub.f32 %v2141_v38, %v2149_v41  ;;  %900 = vst.msk [vmem:[#allocation2 + $0x8] sm:$0xff] %vm370_vm2, %v2149_v41  ;;  %620 = vperm.xlu1 %1537, %v2149_v41  }
 0x20f   : > { %v593_v44 = vpop.xlane.xlu1 %592 }
 0x210   : > { %v2159_v45 = vmax.f32 %v2151_v42, %v593_v44  ;;  %v607_v21 = vmul.f32 1.442695, %v602_v43 }
 0x212   : > { %v603_v47 = vsub.f32 %v2151_v42, %v2159_v45  ;;  %901 = vst.msk [vmem:[#allocation2 + $0x10] sm:$0xff] %vm370_vm2, %v2159_v45  ;;  %625 = vperm.xlu1 %1537, %v2159_v45  }
 0x213   : > { %v596_v48 = vpop.xlane.xlu1 %595 }
 0x214   : > { %v2169_v49 = vmax.f32 %v2161_v46, %v596_v48  ;;  %v609_v22 = vmul.f32 1.442695, %v603_v47  ;;  %v916_v48 = vld [vmem:[#allocation11] sm:$0xf] }
 0x216   : > { %v604_v50 = vsub.f32 %v2161_v46, %v2169_v49  ;;  %902 = vst.msk [vmem:[#allocation2 + $0x18] sm:$0xff] %vm370_vm2, %v2169_v49  ;;  %630 = vperm.xlu1 %1537, %v2169_v49  }
 0x289   : > { %v616_v55 = vpop.permute.xlu0 %615 }
 0x28a   : > { %v633_v56 = vsub.f32 %v437_v14, %v616_v55 }
 0x28c   : > { %v637_v57 = vmul.f32 1.442695, %v633_v56  ;;  %v674_v56 = vld [vmem:[#allocation4] sm:$0xff] }
 0x28d   : > { %v621_v58 = vpop.permute.xlu1 %620 }
 0x28e   : > { %1538 = vpow2.f32 %v637_v57  ;;  %v634_v59 = vsub.f32 %v2126_v15, %v621_v58  ;;  %v605_v15 = vmul.f32 1.442695, %v601_v39  ;;  %v648_v39 = vld [vmem:[#allocation3 + $0x18] sm:$0xff] }
 0x290   : > { %v639_v60 = vmul.f32 1.442695, %v634_v59 }
 0x291   : > { %v626_v61 = vpop.permute.xlu1 %625 }
 0x292   : > { %1540 = vpow2.f32 %v639_v60  ;;  %v635_v62 = vsub.f32 %v529_v24, %v626_v61  ;;  %v611_v24 = vmul.f32 1.442695, %v604_v50  ;;  %v981_v50 = vsel %vm709_vm3, %v916_v48, 0  ;;  %v675_v60 = vld [vmem:[#allocation4 + $0x8] sm:$0xff] }
 0x294   : > { %v641_v63 = vmul.f32 1.442695, %v635_v62 }
 0x295   : > { %v631_v1 = vpop.permute.xlu1 %630 }
 0x296   : > { %1542 = vpow2.f32 %v641_v63  ;;  %v636_v2 = vsub.f32 %v2131_v25, %v631_v1 }
 0x298   : > { %v1539_v4 = vpop.eup %1538  ;;  %v643_v5 = vmul.f32 1.442695, %v636_v2 }
 0x299   : > { %v653_v6 = vsel %vm379_vm0, %v1539_v4, 0.0  ;;  %v702_v7 = vpack.c.bf16 %v1539_v4, %v1539_v4 }
 0x29a   : > { %1544 = vpow2.f32 %v643_v5  ;;  %654 = vadd.xlane.f32.xlu0 %v653_v6  ;;  %v676_v5 = vld [vmem:[#allocation4 + $0x10] sm:$0xff] }
 0x29b   : > { %1402 = vmatmul.mubr.msk.bf16.vlgmr.msra.gmra.mrb[8].mxu0 %vm379_vm0, %v702_v7  ;;  %1546 = vpow2.f32 %v605_v15 }
 0x29c   : > { %v1541_v10 = vpop.eup %1540  ;;  %1412 = vmatpush3.bf16.msra.mxu0 %v803_v8  ;;  %1413 = vmatprep.mubr.msk.bf16.mxu0 %vm1779_vm1, %v1778_v0  ;;  %1548 = vpow2.f32 %v607_v21 }
 0x29d   : > { %v656_v11 = vsel %vm379_vm0, %v1541_v10, 0.0  ;;  %v703_v12 = vpack.c.bf16 %v1541_v10, %v1541_v10  ;;  %1423 = vmatprep.subr.bf16.mxu0 %v1778_v0  ;;  %1550 = vpow2.f32 %v609_v22 }
 0x29e   : > { %657 = vadd.xlane.f32.xlu1 %v656_v11  ;;  %1552 = vpow2.f32 %v611_v24 }
 0x29f   : > { %1408 = vmatmul.mubr.msk.bf16.vlgmr.msra.gmra.mrb[8].mxu1 %vm379_vm0, %v703_v12  ;;  %v677_v12 = vld [vmem:[#allocation4 + $0x18] sm:$0xff] }
 0x2a0   : > { %v1543_v14 = vpop.eup %1542  ;;  %1418 = vmatpush3.bf16.msra.mxu1 %v849_v13  ;;  %1419 = vmatprep.mubr.msk.bf16.mxu1 %vm1779_vm1, %v1778_v0 }
 0x2a1   : > { %v659_v16 = vsel %vm379_vm0, %v1543_v14, 0.0  ;;  %v704_v17 = vpack.c.bf16 %v1543_v14, %v1543_v14  ;;  %1429 = vmatprep.subr.bf16.mxu1 %v1778_v0 }
 0x2a2   : > { %660 = vadd.xlane.f32.xlu1 %v659_v16 }
 0x2a3   : > { %1414 = vmatmul.mubr.msk.bf16.vlgmr.msra.gmra.mrb[12].mxu0 %vm379_vm0, %v704_v17 }
 0x2a4   : > { %v1545_v18 = vpop.eup %1544  ;;  %1425 = vmatprep.mubr.msk.bf16.mxu0 %vm1779_vm1, %v1778_v0  ;;  %1424 = vmatpush3.bf16.msra.mxu0 %v935_v53 }
 0x2a5   : > { %v662_v19 = vsel %vm379_vm0, %v1545_v18, 0.0  ;;  %v705_v20 = vpack.c.bf16 %v1545_v18, %v1545_v18  ;;  %v1547_v23 = vpop.eup %1546  ;;  %1435 = vmatprep.subr.bf16.mxu0 %v1778_v0 }
 0x2a6   : > { %663 = vadd.xlane.f32.xlu1 %v662_v19  ;;  %v1549_v25 = vpop.eup %1548  ;;  %v649_v29 = vmul.f32 %v1547_v23, %v645_v28 }
 0x2a7   : > { %1420 = vmatmul.mubr.msk.bf16.vlgmr.msra.gmra.mrb[12].mxu1 %vm379_vm0, %v705_v20  ;;  %v1551_v26 = vpop.eup %1550  ;;  %v650_v33 = vmul.f32 %v1549_v25, %v646_v31 }
 0x2a8   : > { %1431 = vmatprep.mubr.msk.bf16.mxu1 %vm1779_vm1, %v1778_v0  ;;  %v1553_v27 = vpop.eup %1552  ;;  %v651_v37 = vmul.f32 %v1551_v26, %v647_v35  ;;  %1430 = vmatpush3.bf16.msra.mxu1 %v981_v50 }
 0x2a9   : > { %v652_v42 = vmul.f32 %v1553_v27, %v648_v39  ;;  %1441 = vmatprep.subr.bf16.mxu1 %v1778_v0 }
 0x2b0   : > { %680 = vperm.xlu0 %1536, %v1547_v23  }
 0x2b7   : > { %685 = vperm.xlu1 %1537, %v1549_v25  }
 0x2bb   : > { %690 = vperm.xlu1 %1537, %v1551_v26  }
 0x2bf   : > { %695 = vperm.xlu1 %1537, %v1553_v27   ;;  %v1097_v27 = vld [vmem:[#allocation11 + $0xc] sm:$0xf] }
 0x327   : > { %v655_v30 = vpop.xlane.xlu0 %654 }
 0x328   : > { %v665_v32 = vadd.f32 %v655_v30, %v649_v29  ;;  %v1102_v30 = vsel %vm709_vm3, %v1097_v27, 0 }
 0x32a   : > { %670 = vst.msk [vmem:[#allocation3] sm:$0xff] %vm370_vm2, %v665_v32 }
 0x32b   : > { %v658_v34 = vpop.xlane.xlu1 %657 }
 0x32c   : > { %v666_v36 = vadd.f32 %v658_v34, %v650_v33  ;;  %v1036_v33 = vld [vmem:[#allocation11 + $0x8] sm:$0xf] }
 0x32e   : > { %671 = vst.msk [vmem:[#allocation3 + $0x8] sm:$0xff] %vm370_vm2, %v666_v36  ;;  %v1041_v36 = vsel %vm709_vm3, %v1036_v33, 0 }
 0x32f   : > { %v661_v38 = vpop.xlane.xlu1 %660  ;;  %v681_v57 = vpop.permute.xlu0 %680 }
 0x330   : > { %v667_v40 = vadd.f32 %v661_v38, %v651_v37  ;;  %v698_v59 = vmul.f32 %v681_v57, %v674_v56 }
 0x331   : > { %v906_v41 = vld [vmem:[#allocation3] sm:$0xff] }
 0x332   : > { %672 = vst.msk [vmem:[#allocation3 + $0x10] sm:$0xff] %vm370_vm2, %v667_v40  ;;  %1554 = vrcp.f32 %v906_v41 }
 0x333   : > { %v664_v43 = vpop.xlane.xlu1 %663 }
 0x334   : > { %v668_v44 = vadd.f32 %v664_v43, %v652_v42 }
 0x335   : > { %v918_v45 = vld [vmem:[#allocation3 + $0x8] sm:$0xff] }
 0x336   : > { %673 = vst.msk [vmem:[#allocation3 + $0x18] sm:$0xff] %vm370_vm2, %v668_v44  ;;  %1556 = vrcp.f32 %v918_v45 }
 0x337   : > { %v686_v58 = vpop.permute.xlu1 %685 }
 0x338   : > { %v699_v3 = vmul.f32 %v686_v58, %v675_v60  ;;  %v1343_v58 = vld [vmem:[%s2301_s4] ss:$0 sm:$0xff] }
 0x339   : > { %v1024_v46 = vld [vmem:[#allocation3 + $0x10] sm:$0xff] }
 0x33a   : > { %1558 = vrcp.f32 %v1024_v46 }
 0x33b   : > { %v691_v1 = vpop.permute.xlu1 %690 }
 0x33c   : > { %v1555_v47 = vpop.eup %1554  ;;  %v700_v10 = vmul.f32 %v691_v1, %v676_v5 }
 0x33d   : > { %911 = vperm.xlu0 %1536, %v1555_v47   ;;  %v1085_v49 = vld [vmem:[#allocation3 + $0x18] sm:$0xff] }
 0x33e   : > { %1560 = vrcp.f32 %v1085_v49 }
 0x33f   : > { %v696_v13 = vpop.permute.xlu1 %695 }
 0x340   : > { %v1557_v52 = vpop.eup %1556  ;;  %v701_v18 = vmul.f32 %v696_v13, %v677_v12 }
 0x341   : > { %924 = vperm.xlu1 %1537, %v1557_v52  }
 0x344   : > { %v1559_v54 = vpop.eup %1558 }
 0x345   : > { %1030 = vperm.xlu1 %1537, %v1559_v54  }
 0x348   : > { %v1561_v55 = vpop.eup %1560 }
 0x349   : > { %1091 = vperm.xlu0 %1536, %v1561_v55  }
 0x36e   : > { %v747_v61 = vpop.f32.mrb[8].mxu0 }
 0x36f   : > { %v891_v62 = vadd.f32 %v747_v61, %v698_v59  ;;  %v1403_v63 = vpop.f32.mrb[9].mxu0 }
 0x370   : > { %v750_v2 = vpop.f32.mrb[10].mxu0 }
 0x371   : > { %895 = vst.msk [vmem:[#allocation4] sm:$0xff] %vm379_vm0, %v891_v62  ;;  %v1404_v4 = vpop.f32.mrb[11].mxu0 }
 0x372   : > { %v793_v6 = vpop.f32.mrb[8].mxu1 }
 0x373   : > { %v892_v7 = vadd.f32 %v793_v6, %v699_v3  ;;  %v1409_v8 = vpop.f32.mrb[9].mxu1 }
 0x374   : > { %v796_v9 = vpop.f32.mrb[10].mxu1 }
 0x375   : > { %896 = vst.msk [vmem:[#allocation4 + $0x8] sm:$0xff] %vm379_vm0, %v892_v7  ;;  %v1410_v11 = vpop.f32.mrb[11].mxu1 }
 0x376   : > { %v839_v14 = vpop.f32.mrb[12].mxu0 }
 0x377   : > { %v893_v15 = vadd.f32 %v839_v14, %v700_v10  ;;  %v1415_v16 = vpop.f32.mrb[13].mxu0 }
 0x378   : > { %v842_v17 = vpop.f32.mrb[14].mxu0  ;;  %v908_v25 = vld [vmem:[#allocation4] sm:$0xff] }
 0x379   : > { %897 = vst.msk [vmem:[#allocation4 + $0x10] sm:$0xff] %vm379_vm0, %v893_v15  ;;  %v1416_v19 = vpop.f32.mrb[15].mxu0 }
 0x37a   : > { %v885_v20 = vpop.f32.mrb[12].mxu1 }
 0x37b   : > { %v894_v21 = vadd.f32 %v885_v20, %v701_v18  ;;  %v1421_v22 = vpop.f32.mrb[13].mxu1 }
 0x37c   : > { %v888_v23 = vpop.f32.mrb[14].mxu1  ;;  %v921_v31 = vld [vmem:[#allocation4 + $0x8] sm:$0xff] }
 0x37d   : > { %898 = vst.msk [vmem:[#allocation4 + $0x18] sm:$0xff] %vm379_vm0, %v894_v21  ;;  %v1422_v24 = vpop.f32.mrb[15].mxu1 }
 0x380   : > { %v1027_v38 = vld [vmem:[#allocation4 + $0x10] sm:$0xff] }
 0x384   : > { %v1088_v40 = vld [vmem:[#allocation4 + $0x18] sm:$0xff] }
 0x3bc   : > { %v912_v26 = vpop.permute.xlu0 %911 }
 0x3bd   : > { %v914_v28 = vmul.f32 %v912_v26, %v908_v25 }
 0x3bf   : > { %v915_v29 = vpack.c.bf16 %v914_v28, %v914_v28 }
 0x3c0   : > { %v925_v32 = vpop.permute.xlu1 %924 }
 0x3c1   : > { %v927_v34 = vmul.f32 %v925_v32, %v921_v31  ;;  %1432 = vmatmul.mubr.msk.bf16.vlgmr.msra.gmra.mrb[16].mxu1 %vm379_vm0, %v915_v29 }
 0x3c2   : > { %1442 = vmatpush3.bf16.msra.mxu1 %v1102_v30  ;;  %1443 = vmatprep.mubr.msk.bf16.mxu1 %vm1779_vm1, %v1778_v0 }
 0x3c3   : > { %v928_v35 = vpack.c.bf16 %v927_v34, %v927_v34 }
 0x3c4   : > { %v1031_v37 = vpop.permute.xlu1 %1030 }
 0x3c5   : > { %1426 = vmatmul.mubr.msk.bf16.vlgmr.msra.gmra.mrb[16].mxu0 %vm379_vm0, %v928_v35  ;;  %v1033_v39 = vmul.f32 %v1031_v37, %v1027_v38 }
 0x3c6   : > { %1436 = vmatpush3.bf16.msra.mxu0 %v1041_v36  ;;  %1437 = vmatprep.mubr.msk.bf16.mxu0 %vm1779_vm1, %v1778_v0 }
 0x3c7   : > { %v1034_v43 = vpack.c.bf16 %v1033_v39, %v1033_v39 }
 0x3c8   : > { %v1092_v41 = vpop.permute.xlu0 %1091 }
 0x3c9   : > { %v1094_v42 = vmul.f32 %v1092_v41, %v1088_v40 }
 0x3cb   : > { %v1095_v44 = vpack.c.bf16 %v1094_v42, %v1094_v42 }
 0x3cd   : > { %1438 = vmatmul.mubr.msk.bf16.vlgmr.msra.gmra.mrb[20].mxu0 %vm379_vm0, %v1034_v43  ;;  %1444 = vmatmul.mubr.msk.bf16.vlgmr.msra.gmra.mrb[20].mxu1 %vm379_vm0, %v1095_v44 }
 0x494   : > { %v1017_v45 = vpop.f32.mrb[16].mxu1 }
 0x495   : > { %v1433_v46 = vpop.f32.mrb[17].mxu1 }
 0x496   : > { %v1020_v47 = vpop.f32.mrb[18].mxu1 }
 0x497   : > { %v1434_v48 = vpop.f32.mrb[19].mxu1 }
 0x498   : > { %v971_v49 = vpop.f32.mrb[16].mxu0 }
 0x499   : > { %v1018_v50 = vadd.f32 %v1017_v45, %v971_v49  ;;  %v1427_v51 = vpop.f32.mrb[17].mxu0 }
 0x49a   : > { %v974_v0 = vpop.f32.mrb[18].mxu0 }
 0x49b   : > { %v1428_v52 = vpop.f32.mrb[19].mxu0 }
 0x4a0   : > { %v1077_v53 = vpop.f32.mrb[20].mxu0  ;;  %v1138_v54 = vpop.f32.mrb[20].mxu1 }
 0x4a1   : > { %v1083_v55 = vadd.f32 %v1077_v53, %v1018_v50  ;;  %v1439_v56 = vpop.f32.mrb[21].mxu0  ;;  %v1445_v57 = vpop.f32.mrb[21].mxu1 }
 0x4a2   : > { %v1080_v59 = vpop.f32.mrb[22].mxu0  ;;  %v1141_v60 = vpop.f32.mrb[22].mxu1 }
 0x4a3   : > { %v1144_v61 = vadd.f32 %v1138_v54, %v1083_v55  ;;  %v1440_v62 = vpop.f32.mrb[23].mxu0  ;;  %v1446_v63 = vpop.f32.mrb[23].mxu1 }
 0x4a5   : > { %v1152_v1 = vadd.f32 %v1343_v58, %v1144_v61 }
 0x4a7   : > { %1154 = vst.msk [vmem:[%s364_s16] sm:$0xff] %vm1153_vm4, %v1152_v1 }
 0x4a8   : > { %1693 = shalt.err (!%p1690_p4)
}
 0x4a9   : > { %s1694_s27 = scalar_lea.hbm %s2248_s24, 128  ;;  %s1698_s1 = scalar_lea.hbm %s2302_s5, 256 }
 0x4aa   : > { %p1695_p3 = scmp.ne.s32.totalorder %s2248_s24, %s1694_s27  ;;  %p1699_p8 = scmp.lt.u32.totalorder %s2248_s24, %s2302_s5 }
 0x4ab   : > { %p1700_p12 = scmp.lt.u32.totalorder %s1698_s1, %s1694_s27  ;;  %p1702_p2 = scmp.lt.u32.totalorder %s1694_s27, %s2248_s24 }
 0x4ac   : > { %p1696_p6 = pnand %p1695_p3, %p2349_p13 }
 0x4ad   : > { %p1701_p1 = por %p1700_p12, %p1699_p8 }
 0x4ae   : > { %p1697_p9 = pneg %p1696_p6 }
 0x4af   : > { %p1703_p11 = por %p1702_p2, %p1701_p1 }
 0x4b1   : > { %p1704_p0 = pnand %p1703_p11, %p1697_p9 }
 0x4b3   : > { %1707 = shalt.err (!%p1704_p0)
}
 0x4b4   : > { %1457 = dma.vmem_to_hbm [thread:$0]  (%p2349_p13), %s2250_s9, 128, %s2248_s24, %s1156_s28  }
 0x4b5 PF: > { %s2350_s13 = sld [smem:[#allocation20_spill]]  ;;  %s1182_s7 = sand.u32 1, %s1750_s18  }
 0x4b6   : > { %p2351_p5 = scmp.ne.s32.totalorder %s2335_s12, 0  ;;  %s1183_s22 = scalar_lea.sflag [#allocation7], %s1182_s7 }
 0x4bb   : > { %p2352_p10 = scmp.ge.s32.totalorder %s2350_s13, 2 }
 0x4bd   : > { %p1474_p7 = pnand %p2352_p10, %p2351_p5 }
 0x4bf   : > { %1745 = dma.done.wait (!%p1474_p7), %s1183_s22, 128  }
 0x4c0   : > { %1747 = vsyncadd (!%p1474_p7), %s1183_s22, 4294967168  ;;  %s25_s23 = sadd.s32 1, %s2350_s13   ;;  %s2353_s25 = sld [smem:[#allocation18_spill]] }
 0x4c1   : > { %p22_p4 = scmp.ge.s32.totalorder %s25_s23, 4   ;;  %s2354_s20 = sld [smem:[#allocation22_spill]] }
 0x4c2   : > { %s2355_s21 = sld [smem:[#allocation19_spill]]  ;;  %s2356_s22 = sld [smem:[#allocation21_spill]] }
 0x4c3   : > { %s2357_s18 = smov %s1754_s19  ;;  %24 = sbr.rel (!%p22_p4) target bundleno = 12 (0xc), region = 130 }
 0x4c6   : > { %s2358_s19 = smov %s2353_s25 }
 0x4ca   :  { %1188 = vsyncpa [#allocation6], 1 }
 0x4cb   :  { %1190 = vsyncpa [#allocation6 + $0x1], 1 }
 0x4cc   :  { %1191 = vsyncpa [#allocation9], 1 }
 0x4cd   :  { %1193 = vsyncpa [#allocation9 + $0x1], 1 }
 0x4ce   :  { %1194 = vsyncpa [#allocation12], 1 }
 0x4cf   :  { %1195 = vsyncpa [#allocation7], 1 }
 0x4d0   :  { %1197 = vsyncpa [#allocation7 + $0x1], 1 }

// kernel: tpu_custom_call.1
= control target key start
LH: loop header
LB: loop body
LE: loop exit
PB: predicated region body
PF: predicated region fallthrough
CT: control target
= control target key end

     0   :  { %s2297_s0 = inlined_call_operand.hbm [shape: bf16[2,4,8,8], index: 0, kind: input, shape index: {}]   ;;  %s2298_s1 = inlined_call_operand.hbm [shape: bf16[2,4,8,8], index: 1, kind: input, shape index: {}]   ;;  %s2299_s2 = inlined_call_operand.hbm [shape: bf16[2,4,8,8], index: 2, kind: input, shape index: {}]   ;;  %s2300_s3 = inlined_call_operand.hbm [shape: bf16[4,8,32], index: 3, kind: input, shape index: {}]   ;;  %s2301_s4 = inlined_call_operand.vmem [shape: f32[1,32], index: 4, kind: input, shape index: {}]   ;;  %s2302_s5 = inlined_call_operand.hbm [shape: f32[2,8,32], index: 5, kind: output, shape index: {}]  }
   0x1   :  { %2322 = sst [smem:[#allocation23_spill]] %s2297_s0 }
   0x2   :  { %2323 = sst [smem:[#allocation24_spill]] %s2298_s1 }
   0x3   :  { %10 = vsyncpa [#allocation6], 0 }
   0x4   :  { %12 = vsyncpa [#allocation6 + $0x1], 0 }
   0x5   :  { %13 = vsyncpa [#allocation9], 0 }
   0x6   :  { %15 = vsyncpa [#allocation9 + $0x1], 0 }
   0x7   :  { %16 = vsyncpa [#allocation12], 0 }
   0x8   :  { %17 = vsyncpa [#allocation7], 0 }
   0x9   :  { %19 = vsyncpa [#allocation7 + $0x1], 0  ;;  %s1813_s18 = smov 0   ;;  %s1815_s19 = smov 0  }
   0xa   :  { %s1817_s20 = smov 0   ;;  %s1819_s21 = smov 0  }
   0xb   :  { %s1821_s22 = smov 0   ;;  %s1823_s23 = smov 0  }
   0xc LB: > { %2324 = sst [smem:[#allocation18_spill]] %s1758_s20  ;;  %s44_s24 = sadd.s32 1, %s1766_s22  ;;  %s1770_s23 = sphi %s1823_s23, %s25_s23   ;;  %s1766_s22 = sphi %s1821_s22, %s2356_s22   ;;  %s1762_s21 = sphi %s1819_s21, %s2355_s21   ;;  %s1758_s20 = sphi %s1817_s20, %s2354_s20   ;;  %s1754_s19 = sphi %s1815_s19, %s2358_s19   ;;  %s1750_s18 = sphi %s1813_s18, %s2357_s18  }
   0xd   : > { %2325 = sst [smem:[#allocation19_spill]] %s1766_s22  ;;  %s53_s25 = sadd.s32 1, %s1758_s20 }
   0xe   : > { %2326 = sst [smem:[#allocation20_spill]] %s1770_s23  ;;  %p46_p0 = scmp.ge.s32.totalorder %s44_s24, 2 }
   0xf   : > { %p2303_p1 = scmp.ne.s32.totalorder %s1758_s20, %s1754_s19  ;;  %p61_p2 = scmp.eq.s32.totalorder %s1770_s23, 0 }
  0x10   : > { %s2360_s24 = smov (%p46_p0, %s44_s24), 0  ;;  %p1478_p6 = scmp.lt.s32.totalorder %s1770_s23, 2 }
  0x11   : > { %2327 = sst [smem:[#allocation21_spill]] %s2360_s24  ;;  %p62_p3 = por %p61_p2, %p2303_p1 }
  0x12   : > { %s48_s26 = ssub.s32 %s1766_s22, %s2360_s24  ;;  %s2308_s27 = sand.u32 1, %s1758_s20  }
  0x13   : > { %p51_p5 = scmp.eq.s32.totalorder %s48_s26, 0  ;;  %s1859_s28 = sshll.u32 %s1766_s22, 8 }
  0x14   : > { %s1866_s30 = sshll.u32 %s2308_s27, 4  ;;  %p1868_p7 = pnand %p1478_p6, %p62_p3 }
  0x15   : > { %s1862_s29 = scalar_select %p51_p5, %s1758_s20, %s53_s25  }
  0x16   : > { %s2329_s6 = scalar_select %p1868_p7, 1, 0 }
  0x17   : > { %2328 = sst [smem:[#allocation22_spill]] %s1862_s29  ;;  %s254_s7 = sand.u32 1, %s1770_s23  }
  0x18   : > { %s2330_s1 = sld [smem:[#allocation24_spill]]  ;;  %s258_s11 = scalar_lea.vmem [#allocation8], %s1866_s30 }
  0x19   : > { %s266_s12 = sshll.u32 %s258_s11, 4  ;;  %s1882_s13 = scalar_lea.sflag [#allocation9], %s254_s7  ;;  %s1880_s12 = int_to_ptr.vmem [resolvable:$true] %s266_s12 }
  0x1a   : > { %p1888_p9 = pneg %p1868_p7 }
  0x1c   : > { %s2331_s15 = scalar_select %p1888_p9, 1, 0 }
  0x1e   : > { %s1877_s10 = scalar_lea.hbm %s2330_s1, %s1859_s28  ;;  %s1567_s25 = scalar_lea.hbm %s2330_s1, 512 }
  0x1f   : > { %s1562_s14 = scalar_lea.hbm %s1877_s10, 256  ;;  %p1568_p12 = scmp.lt.u32.totalorder %s1877_s10, %s2330_s1 }
  0x20   : > { %p1563_p8 = scmp.ne.s32.totalorder %s1877_s10, %s1562_s14  ;;  %p1569_p13 = scmp.lt.u32.totalorder %s1567_s25, %s1562_s14 }
  0x21   : > { %p1571_p2 = scmp.lt.u32.totalorder %s1562_s14, %s1877_s10 }
  0x22   : > { %p1565_p10 = pnand %p1888_p9, %p1563_p8  ;;  %p1570_p0 = por %p1569_p13, %p1568_p12 }
  0x24   : > { %p1566_p11 = pneg %p1565_p10  ;;  %p1572_p3 = por %p1571_p2, %p1570_p0 }
  0x26   : > { %p1573_p5 = pnand %p1572_p3, %p1566_p11 }
  0x28   : > { %1576 = shalt.err (!%p1573_p5)
}
  0x29   : > { %s1577_s7 = scalar_lea.vmem %s1880_s12, 256  ;;  %s1772_s9 = smov [#allocation8]  }
  0x2a   : > { %p1578_p6 = scmp.ne.s32.totalorder %s1880_s12, %s1577_s7  ;;  %s1582_s11 = sshll.u32 %s1772_s9, 4  ;;  %s1583_s11 = int_to_ptr.vmem [resolvable:$false] %s1582_s11 }
  0x2b   : > { %s1584_s16 = scalar_lea.vmem %s1583_s11, 512  ;;  %p1585_p4 = scmp.lt.s32.totalorder %s1880_s12, %s1583_s11 }
  0x2c   : > { %p1580_p8 = pnand %p1578_p6, %p1888_p9  ;;  %p1586_p1 = scmp.lt.s32.totalorder %s1584_s16, %s1577_s7 }
  0x2e   : > { %p1581_p10 = pneg %p1580_p8  ;;  %p1587_p12 = por %p1586_p1, %p1585_p4 }
  0x30   : > { %p1588_p13 = pnand %p1587_p12, %p1581_p10 }
  0x32   : > { %1591 = shalt.err (!%p1588_p13)
}
  0x33   : > { %s2304_s14 = smov 64   ;;  %s2306_s17 = smov 4  }
  0x34   : > { %1469 = dma.hbm_to_vmem [thread:$0]  (!%p1868_p7), %s1877_s10, 256, %s1880_s12, %s1882_s13, %s2304_s14, %s2304_s14, %s2306_s17  }
  0x35   : > { %s1916_s25 = sadd.s32 4294967295, %s1770_s23   ;;  %s1312_s26 = sadd.s32 4294967294, %s1770_s23  }
  0x36   : > { %p66_p1 = scmp.ne.s32.totalorder %s1754_s19, %s1750_s18  ;;  %p2313_p4 = scmp.eq.s32.totalorder %s1916_s25, 0 }
  0x37   : > { %p190_p11 = scmp.eq.s32.totalorder %s1916_s25, 1  ;;  %p196_p0 = scmp.eq.s32.totalorder %s1312_s26, 1 }
  0x38   : > { %p1313_p2 = scmp.ge.s32.totalorder %s1770_s23, 1  ;;  %p1926_p3 = por %p2313_p4, %p66_p1 }
  0x39   : > { %p2333_p5 = scmp.ne.s32.totalorder %s1758_s20, %s1754_s19  ;;  %p1937_p8 = por %p196_p0, %p66_p1 }
  0x3a   : > { %s2332_s8 = scalar_select %p1926_p3, 1, 0 }
  0x3b   : > { %p1933_p6 = por %p190_p11, %p2333_p5  ;;  %p203_p10 = scmp.lt.s32.totalorder %s1770_s23, 3 }
  0x3c   : > { %s2335_s12 = scalar_select %p1937_p8, 1, 0 }
  0x3d   : > { %s2334_s10 = scalar_select %p1933_p6, 1, 0 }
  0x3e   : > { %p1942_p12 = pnand %p1313_p2, %p203_p10  ;;  %s1775_s9 = smov [#allocation11]  }
  0x3f   : > { %s215_s11 = sshll.u32 %s1775_s9, 4  ;;  %s2337_s0 = sld [smem:[#allocation23_spill]]  ;;  %s1946_s11 = int_to_ptr.vmem [resolvable:$true] %s215_s11 }
  0x40   : > { %s2336_s7 = scalar_select %p1942_p12, 1, 0 }
  0x41   : > { %p1459_p13 = pneg %p1942_p12  ;;  %s236_s17 = scalar_lea.vmem [#allocation5], %s1866_s30 }
  0x42   : > { %s244_s27 = sshll.u32 %s236_s17, 4  ;;  %s2339_s9 = sand.u32 1, %s1758_s20   ;;  %s1963_s27 = int_to_ptr.vmem [resolvable:$true] %s244_s27 }
  0x43   : > { %p1959_p1 = pnand %p1459_p13, %p2313_p4  ;;  %s1967_s24 = scalar_lea.sflag [#allocation6], %s2339_s9 }
  0x45   : > { %s1954_s14 = scalar_lea.hbm %s2337_s0, %s1859_s28  ;;  %s1597_s29 = scalar_lea.hbm %s2337_s0, 512 }
  0x46   : > { %s2338_s1 = scalar_select %p1959_p1, 1, 0 }
  0x47   : > { %s1592_s22 = scalar_lea.hbm %s1954_s14, 256  ;;  %p1598_p5 = scmp.lt.u32.totalorder %s1954_s14, %s2337_s0 }
  0x48   : > { %p1593_p11 = scmp.ne.s32.totalorder %s1954_s14, %s1592_s22  ;;  %p1599_p10 = scmp.lt.u32.totalorder %s1597_s29, %s1592_s22 }
  0x49   : > { %p1601_p4 = scmp.lt.u32.totalorder %s1592_s22, %s1954_s14 }
  0x4a   : > { %p1595_p0 = pnand %p1593_p11, %p1888_p9  ;;  %p1600_p13 = por %p1599_p10, %p1598_p5 }
  0x4c   : > { %p1596_p2 = pneg %p1595_p0  ;;  %p1602_p8 = por %p1601_p4, %p1600_p13 }
  0x4e   : > { %p1603_p6 = pnand %p1602_p8, %p1596_p2 }
  0x50   : > { %1606 = shalt.err (!%p1603_p6)
}
  0x51   : > { %s1607_s9 = scalar_lea.vmem %s1963_s27, 256  ;;  %s1776_s16 = smov [#allocation5]  }
  0x52   : > { %p1608_p11 = scmp.ne.s32.totalorder %s1963_s27, %s1607_s9  ;;  %s1612_s26 = sshll.u32 %s1776_s16, 4  ;;  %s1613_s26 = int_to_ptr.vmem [resolvable:$false] %s1612_s26 }
  0x53   : > { %s1614_s23 = scalar_lea.vmem %s1613_s26, 512  ;;  %p1615_p12 = scmp.lt.s32.totalorder %s1963_s27, %s1613_s26 }
  0x54   : > { %p1610_p0 = pnand %p1608_p11, %p1888_p9  ;;  %p1616_p1 = scmp.lt.s32.totalorder %s1614_s23, %s1607_s9 }
  0x56   : > { %p1611_p3 = pneg %p1610_p0  ;;  %p1617_p5 = por %p1616_p1, %p1615_p12 }
  0x58   : > { %p1618_p10 = pnand %p1617_p5, %p1611_p3 }
  0x5a   : > { %1621 = shalt.err (!%p1618_p10)
}
  0x5b   : > { %s2340_s22 = smov 4   ;;  %s2341_s29 = smov 64  }
  0x5c   : > { %1466 = dma.hbm_to_vmem [thread:$0]  (!%p1868_p7), %s1954_s14, 256, %s1963_s27, %s1967_s24, %s2341_s29, %s2341_s29, %s2340_s22  }
  0x5d   : > { %s1622_s16 = scalar_lea.hbm %s2300_s3, 256  ;;  %p2342_p3 = scmp.ne.s32.totalorder %s2338_s1, 0 }
  0x5e   : > { %p1623_p4 = scmp.ne.s32.totalorder %s2300_s3, %s1622_s16  ;;  %p1629_p1 = scmp.lt.u32.totalorder %s1622_s16, %s2300_s3 }
  0x5f   : > { %p1624_p6 = pneg %p2342_p3 }
  0x61   : > { %p1625_p8 = pnand %p1624_p6, %p1623_p4 }
  0x63   : > { %p1626_p12 = pneg %p1625_p8 }
  0x65   : > { %p1631_p2 = pnand %p1629_p1, %p1626_p12 }
  0x67   : > { %1634 = shalt.err (!%p1631_p2)
}
  0x68   : > { %s1635_s24 = scalar_lea.vmem %s1946_s11, 256  ;;  %p1643_p5 = scmp.lt.s32.totalorder %s1946_s11, %s1946_s11 }
  0x69   : > { %p1636_p13 = scmp.ne.s32.totalorder %s1946_s11, %s1635_s24  ;;  %p1644_p10 = scmp.lt.s32.totalorder %s1635_s24, %s1635_s24 }
  0x6b   : > { %p1638_p11 = pnand %p1636_p13, %p1624_p6  ;;  %p1645_p7 = por %p1644_p10, %p1643_p5 }
  0x6d   : > { %p1639_p0 = pneg %p1638_p11 }
  0x6f   : > { %p1646_p9 = pnand %p1645_p7, %p1639_p0 }
  0x71   : > { %1649 = shalt.err (!%p1646_p9)
}
  0x72   : > { %1462 = dma.hbm_to_vmem [thread:$0]  (!%p2342_p3), %s2300_s3, 256, %s1946_s11, [#allocation12], %s2341_s29, %s2341_s29, %s2340_s22  }
  0x73   : > { %s2022_s17 = scalar_lea.hbm %s2299_s2, %s1859_s28  ;;  %s280_s1 = scalar_lea.vmem [#allocation10], %s1866_s30 }
  0x74   : > { %s288_s16 = sshll.u32 %s280_s1, 4  ;;  %s1650_s26 = scalar_lea.hbm %s2022_s17, 256  ;;  %s2025_s16 = int_to_ptr.vmem [resolvable:$true] %s288_s16 }
  0x75   : > { %p1651_p7 = scmp.ne.s32.totalorder %s2022_s17, %s1650_s26  ;;  %p2343_p9 = scmp.ne.s32.totalorder %s2331_s15, 0 }
  0x76   : > { %s1655_s23 = scalar_lea.hbm %s2299_s2, 512  ;;  %p1656_p3 = scmp.lt.u32.totalorder %s2022_s17, %s2299_s2 }
  0x77   : > { %p1653_p4 = pnand %p1651_p7, %p2343_p9  ;;  %p1657_p8 = scmp.lt.u32.totalorder %s1655_s23, %s1650_s26 }
  0x78   : > { %p1659_p1 = scmp.lt.u32.totalorder %s1650_s26, %s2022_s17 }
  0x79   : > { %p1654_p6 = pneg %p1653_p4  ;;  %p1658_p12 = por %p1657_p8, %p1656_p3 }
  0x7b   : > { %p1660_p2 = por %p1659_p1, %p1658_p12 }
  0x7d   : > { %p1661_p13 = pnand %p1660_p2, %p1654_p6 }
  0x7f   : > { %1664 = shalt.err (!%p1661_p13)
}
  0x80   : > { %s1665_s30 = scalar_lea.vmem %s2025_s16, 256  ;;  %s1777_s0 = smov [#allocation10]  }
  0x81   : > { %p1666_p11 = scmp.ne.s32.totalorder %s2025_s16, %s1665_s30  ;;  %s1670_s20 = sshll.u32 %s1777_s0, 4  ;;  %s1671_s20 = int_to_ptr.vmem [resolvable:$false] %s1670_s20 }
  0x82   : > { %s1672_s27 = scalar_lea.vmem %s1671_s20, 512  ;;  %p1673_p10 = scmp.lt.s32.totalorder %s2025_s16, %s1671_s20 }
  0x83   : > { %p1668_p0 = pnand %p1666_p11, %p2343_p9  ;;  %p1674_p7 = scmp.lt.s32.totalorder %s1672_s27, %s1665_s30 }
  0x85   : > { %p1669_p5 = pneg %p1668_p0  ;;  %p1675_p4 = por %p1674_p7, %p1673_p10 }
  0x87   : > { %p1676_p3 = pnand %p1675_p4, %p1669_p5 }
  0x89   : > { %1679 = shalt.err (!%p1676_p3)
}
  0x8a   : > { %p2344_p6 = scmp.ne.s32.totalorder %s2329_s6, 0  ;;  %p2345_p9 = scmp.ne.s32.totalorder %s2336_s7, 0 }
  0x8b   : > { %s2055_s15 = sand.u32 (!%p2345_p9), 1, %s1754_s19   ;;  %p2346_p8 = scmp.ne.s32.totalorder (!%p2345_p9), %s2332_s8, 0 }
  0x8c   : > { %1472 = dma.hbm_to_vmem [thread:$0]  (!%p2344_p6), %s2022_s17, 256, %s2025_s16, %s1882_s13, %s2341_s29, %s2341_s29, %s2340_s22  }
  0x8d   : > { %300 = sbr.rel (%p2345_p9) target bundleno = 1205 (0x4b5), region = 40  ;;  %s1326_s14 = sshll.u32 (!%p2345_p9), %s2055_s15, 4 }
  0x8e   : > { %s303_s1 = scalar_lea.sflag (!%p2345_p9), [#allocation6], %s2055_s15  ;;  %s2059_s26 = scalar_lea.vmem (!%p2345_p9), [#allocation5], %s1326_s14 }
  0x94   : > { %1733 = dma.done.wait (%p2346_p8), %s303_s1, 256  }
  0x95   : > { %1735 = vsyncadd (%p2346_p8), %s303_s1, 4294967040  ;;  %s311_s6 = sand.u32 1, %s1916_s25   ;;  %s315_s7 = scalar_lea.vmem [#allocation8], %s1326_s14 }
  0x96   : > { %s312_s13 = scalar_lea.sflag [#allocation9], %s311_s6 }
  0x97   : > { %1737 = dma.done.wait (%p2346_p8), %s312_s13, 512  }
  0x98   : > { %1739 = vsyncadd (%p2346_p8), %s312_s13, 4294966784  ;;  %s2070_s22 = scalar_lea.vmem [#allocation10], %s1326_s14  ;;  %p2347_p12 = scmp.eq.s32.totalorder %s1916_s25, 0 }
  0x9a   : > { %1741 = dma.done.wait (%p2347_p12), [#allocation12], 256   ;;  %p2348_p1 = pmov %p2347_p12 }
  0x9b   : > { %vm379_vm0 = vcmask 64512   ;;  %v1778_v0 = vmov 0.0   ;;  %vm1779_vm1 = vmmov 0   ;;  %v388_v1 = vld [vmem:[%s315_s7] sm:$0xf]  ;;  %vm370_vm2 = vcmask 7168  }
  0x9c   : > { %1743 = vsyncadd (%p2348_p1), [#allocation12], 4294967040  ;;  %1375 = vmatprep.subr.bf16.mxu0 %v1778_v0  ;;  %380 = vst.msk [vmem:[#allocation4] sm:$0xff] %vm379_vm0, %v1778_v0  ;;  %1381 = vmatprep.subr.bf16.mxu1 %v1778_v0  ;;  %v389_v2 = vld [vmem:[%s315_s7 + $0x4] sm:$0xf]  ;;  %v401_v3 = vsel %vm379_vm0, %v388_v1, 0 }
  0x9d   : > { %381 = vst.msk [vmem:[#allocation4 + $0x8] sm:$0xff] %vm379_vm0, %v1778_v0  ;;  %382 = vst.msk [vmem:[#allocation4 + $0x10] sm:$0xff] %vm379_vm0, %v1778_v0  ;;  %1377 = vmatprep.mubr.msk.bf16.mxu0 %vm1779_vm1, %v1778_v0  ;;  %1383 = vmatprep.mubr.msk.bf16.mxu1 %vm1779_vm1, %v1778_v0  ;;  %v447_v4 = vsel %vm379_vm0, %v389_v2, 0  ;;  %v390_v5 = vld [vmem:[%s315_s7 + $0x8] sm:$0xf]  ;;  %v1780_v13 = vmov -inf  }
  0x9e   : > { %383 = vst.msk [vmem:[#allocation4 + $0x18] sm:$0xff] %vm379_vm0, %v1778_v0  ;;  %1376 = vmatpush3.bf16.xpose.msra.mxu0 %v401_v3  ;;  %1382 = vmatpush3.bf16.xpose.msra.mxu1 %v447_v4  ;;  %v391_v6 = vld [vmem:[%s315_s7 + $0xc] sm:$0xf]  ;;  %v384_v7 = vld [vmem:[%s2059_s26] sm:$0xf]  ;;  %v493_v9 = vsel %vm379_vm0, %v390_v5, 0 }
  0x9f   : > { %1387 = vmatprep.subr.bf16.mxu0 %v1778_v0  ;;  %1393 = vmatprep.subr.bf16.mxu1 %v1778_v0  ;;  %v385_v8 = vld [vmem:[%s2059_s26 + $0x4] sm:$0xf]  ;;  %v539_v10 = vsel %vm379_vm0, %v391_v6, 0  ;;  %v386_v11 = vld [vmem:[%s2059_s26 + $0x8] sm:$0xf]  ;;  %371 = vst.msk [vmem:[#allocation2] sm:$0xff] %vm370_vm2, %v1780_v13 }
  0xa0   : > { %v387_v12 = vld [vmem:[%s2059_s26 + $0xc] sm:$0xf]  ;;  %372 = vst.msk [vmem:[#allocation2 + $0x8] sm:$0xff] %vm370_vm2, %v1780_v13  ;;  %373 = vst.msk [vmem:[#allocation2 + $0x10] sm:$0xff] %vm370_vm2, %v1780_v13  ;;  %v1781_v34 = vmov 0   ;;  %vm709_vm3 = vcmask 1043456  }
  0xa1   : > { %374 = vst.msk [vmem:[#allocation2 + $0x18] sm:$0xff] %vm370_vm2, %v1780_v13  ;;  %375 = vst.msk [vmem:[#allocation3] sm:$0xff] %vm370_vm2, %v1778_v0  ;;  %1536 = vset.pattern.permute.xlu0 %v1781_v34  ;;  %1537 = vset.pattern.permute.xlu1 %v1781_v34  ;;  %v392_v51 = vld [vmem:[%s2070_s22] sm:$0xf]  ;;  %v393_v53 = vld [vmem:[%s2070_s22 + $0x4] sm:$0xf] }
  0xa2   : > { %376 = vst.msk [vmem:[#allocation3 + $0x8] sm:$0xff] %vm370_vm2, %v1778_v0  ;;  %377 = vst.msk [vmem:[#allocation3 + $0x10] sm:$0xff] %vm370_vm2, %v1778_v0  ;;  %v711_v52 = vsel %vm709_vm3, %v392_v51, 0  ;;  %v757_v54 = vsel %vm709_vm3, %v393_v53, 0  ;;  %v394_v3 = vld [vmem:[%s2070_s22 + $0x8] sm:$0xf] }
  0xa3   : > { %378 = vst.msk [vmem:[#allocation3 + $0x18] sm:$0xff] %vm370_vm2, %v1778_v0  ;;  %v930_v51 = vld [vmem:[#allocation11 + $0x4] sm:$0xf]  ;;  %s1330_s25 = sshll.u32 %s2055_s15, 3  ;;  %s1345_s17 = sshll.u32 %s1762_s21, 7  ;;  %vm1153_vm4 = vcmask 261120  }
  0xa4   : > { %v935_v53 = vsel %vm709_vm3, %v930_v51, 0  ;;  %s364_s16 = scalar_lea.vmem [#allocation13], %s1330_s25  ;;  %s2248_s24 = scalar_lea.hbm %s2302_s5, %s1345_s17 }
  0xa5   : > { %1378 = vmatmul.mubr.msk.bf16.vlgmr.msra.gmra.mrb[0].mxu0 %vm379_vm0, %v384_v7  ;;  %1384 = vmatmul.mubr.msk.bf16.vlgmr.msra.gmra.mrb[0].mxu1 %vm379_vm0, %v385_v8  ;;  %v803_v8 = vsel %vm709_vm3, %v394_v3, 0  ;;  %s1170_s9 = sshll.u32 %s364_s16, 4  ;;  %s1156_s28 = scalar_lea.sflag [#allocation7], %s2055_s15  ;;  %s2250_s9 = int_to_ptr.vmem [resolvable:$true] %s1170_s9 }
  0xa6   : > { %1388 = vmatpush3.bf16.xpose.msra.mxu0 %v493_v9  ;;  %1394 = vmatpush3.bf16.xpose.msra.mxu1 %v539_v10  ;;  %v2136_v35 = vld [vmem:[#allocation2] sm:$0xff]  ;;  %v395_v9 = vld [vmem:[%s2070_s22 + $0xc] sm:$0xf]  ;;  %s1680_s21 = scalar_lea.vmem %s2250_s9, 128  ;;  %p2349_p13 = scmp.ne.s32.totalorder %s2334_s10, 0 }
  0xa7   : > { %1389 = vmatprep.mubr.msk.bf16.mxu0 %vm1779_vm1, %v1778_v0  ;;  %1395 = vmatprep.mubr.msk.bf16.mxu1 %vm1779_vm1, %v1778_v0  ;;  %v2141_v38 = vld [vmem:[#allocation2 + $0x8] sm:$0xff]  ;;  %v2151_v42 = vld [vmem:[#allocation2 + $0x10] sm:$0xff]  ;;  %v849_v13 = vsel %vm709_vm3, %v395_v9, 0  ;;  %p1681_p2 = scmp.ne.s32.totalorder %s2250_s9, %s1680_s21  ;;  %s1782_s30 = smov [#allocation13]  }
  0xa8   : > { %1399 = vmatprep.subr.bf16.mxu0 %v1778_v0  ;;  %1405 = vmatprep.subr.bf16.mxu1 %v1778_v0  ;;  %v2161_v46 = vld [vmem:[#allocation2 + $0x18] sm:$0xff]  ;;  %s1684_s0 = sshll.u32 %s1782_s30, 4  ;;  %s1685_s0 = int_to_ptr.vmem [resolvable:$false] %s1684_s0 }
  0xa9   : > { %p1682_p11 = pnand %p1681_p2, %p2349_p13  ;;  %s1686_s20 = scalar_lea.vmem %s1685_s0, 256 }
  0xaa   : > { %p1687_p5 = scmp.lt.s32.totalorder %s2250_s9, %s1685_s0  ;;  %p1688_p10 = scmp.lt.s32.totalorder %s1686_s20, %s1680_s21 }
  0xab   : > { %p1683_p0 = pneg %p1682_p11 }
  0xac   : > { %p1689_p7 = por %p1688_p10, %p1687_p5 }
  0xad   : > { %1390 = vmatmul.mubr.msk.bf16.vlgmr.msra.gmra.mrb[4].mxu0 %vm379_vm0, %v386_v11  ;;  %1396 = vmatmul.mubr.msk.bf16.vlgmr.msra.gmra.mrb[4].mxu1 %vm379_vm0, %v387_v12 }
  0xae   : > { %1401 = vmatprep.mubr.msk.bf16.mxu0 %vm1779_vm1, %v1778_v0  ;;  %1407 = vmatprep.mubr.msk.bf16.mxu1 %vm1779_vm1, %v1778_v0  ;;  %p1690_p4 = pnand %p1689_p7, %p1683_p0 }
  0xaf   : > { %1400 = vmatpush3.bf16.msra.mxu0 %v711_v52  ;;  %1406 = vmatpush3.bf16.msra.mxu1 %v757_v54 }
  0xb0   : > { %1411 = vmatprep.subr.bf16.mxu0 %v1778_v0  ;;  %1417 = vmatprep.subr.bf16.mxu1 %v1778_v0 }
 0x178   : > { %v437_v14 = vpop.f32.mrb[0].mxu0  ;;  %v2126_v15 = vpop.f32.mrb[0].mxu1 }
 0x179   : > { %v1379_v16 = vpop.f32.mrb[1].mxu0  ;;  %v1385_v17 = vpop.f32.mrb[1].mxu1  ;;  %v585_v18 = vsel %vm379_vm0, %v437_v14, -inf  ;;  %v588_v23 = vsel %vm379_vm0, %v2126_v15, -inf }
 0x17a   : > { %586 = vmax.xlane.f32.xlu0 %v585_v18  ;;  %v440_v19 = vpop.f32.mrb[2].mxu0  ;;  %v486_v20 = vpop.f32.mrb[2].mxu1 }
 0x17b   : > { %v1380_v21 = vpop.f32.mrb[3].mxu0  ;;  %v1386_v22 = vpop.f32.mrb[3].mxu1 }
 0x17e   : > { %589 = vmax.xlane.f32.xlu0 %v588_v23 }
 0x180   : > { %v529_v24 = vpop.f32.mrb[4].mxu0  ;;  %v2131_v25 = vpop.f32.mrb[4].mxu1 }
 0x181   : > { %v1391_v26 = vpop.f32.mrb[5].mxu0  ;;  %v591_v27 = vsel %vm379_vm0, %v529_v24, -inf  ;;  %v1397_v28 = vpop.f32.mrb[5].mxu1  ;;  %v594_v33 = vsel %vm379_vm0, %v2131_v25, -inf }
 0x182   : > { %592 = vmax.xlane.f32.xlu1 %v591_v27  ;;  %v532_v29 = vpop.f32.mrb[6].mxu0  ;;  %v578_v30 = vpop.f32.mrb[6].mxu1  ;;  %v645_v28 = vld [vmem:[#allocation3] sm:$0xff] }
 0x183   : > { %v1392_v31 = vpop.f32.mrb[7].mxu0  ;;  %v1398_v32 = vpop.f32.mrb[7].mxu1 }
 0x184   : > { %v646_v31 = vld [vmem:[#allocation3 + $0x8] sm:$0xff] }
 0x186   : > { %595 = vmax.xlane.f32.xlu1 %v594_v33 }
 0x207   : > { %v587_v36 = vpop.xlane.xlu0 %586 }
 0x208   : > { %v2139_v37 = vmax.f32 %v2136_v35, %v587_v36 }
 0x20a   : > { %v601_v39 = vsub.f32 %v2136_v35, %v2139_v37  ;;  %899 = vst.msk [vmem:[#allocation2] sm:$0xff] %vm370_vm2, %v2139_v37  ;;  %615 = vperm.xlu0 %1536, %v2139_v37   ;;  %v647_v35 = vld [vmem:[#allocation3 + $0x10] sm:$0xff] }
 0x20b   : > { %v590_v40 = vpop.xlane.xlu0 %589 }
 0x20c   : > { %v2149_v41 = vmax.f32 %v2141_v38, %v590_v40 }
 0x20e   : > { %v602_v43 = vsub.f32 %v2141_v38, %v2149_v41  ;;  %900 = vst.msk [vmem:[#allocation2 + $0x8] sm:$0xff] %vm370_vm2, %v2149_v41  ;;  %620 = vperm.xlu1 %1537, %v2149_v41  }
 0x20f   : > { %v593_v44 = vpop.xlane.xlu1 %592 }
 0x210   : > { %v2159_v45 = vmax.f32 %v2151_v42, %v593_v44  ;;  %v607_v21 = vmul.f32 1.442695, %v602_v43 }
 0x212   : > { %v603_v47 = vsub.f32 %v2151_v42, %v2159_v45  ;;  %901 = vst.msk [vmem:[#allocation2 + $0x10] sm:$0xff] %vm370_vm2, %v2159_v45  ;;  %625 = vperm.xlu1 %1537, %v2159_v45  }
 0x213   : > { %v596_v48 = vpop.xlane.xlu1 %595 }
 0x214   : > { %v2169_v49 = vmax.f32 %v2161_v46, %v596_v48  ;;  %v609_v22 = vmul.f32 1.442695, %v603_v47  ;;  %v916_v48 = vld [vmem:[#allocation11] sm:$0xf] }
 0x216   : > { %v604_v50 = vsub.f32 %v2161_v46, %v2169_v49  ;;  %902 = vst.msk [vmem:[#allocation2 + $0x18] sm:$0xff] %vm370_vm2, %v2169_v49  ;;  %630 = vperm.xlu1 %1537, %v2169_v49  }
 0x289   : > { %v616_v55 = vpop.permute.xlu0 %615 }
 0x28a   : > { %v633_v56 = vsub.f32 %v437_v14, %v616_v55 }
 0x28c   : > { %v637_v57 = vmul.f32 1.442695, %v633_v56  ;;  %v674_v56 = vld [vmem:[#allocation4] sm:$0xff] }
 0x28d   : > { %v621_v58 = vpop.permute.xlu1 %620 }
 0x28e   : > { %1538 = vpow2.f32 %v637_v57  ;;  %v634_v59 = vsub.f32 %v2126_v15, %v621_v58  ;;  %v605_v15 = vmul.f32 1.442695, %v601_v39  ;;  %v648_v39 = vld [vmem:[#allocation3 + $0x18] sm:$0xff] }
 0x290   : > { %v639_v60 = vmul.f32 1.442695, %v634_v59 }
 0x291   : > { %v626_v61 = vpop.permute.xlu1 %625 }
 0x292   : > { %1540 = vpow2.f32 %v639_v60  ;;  %v635_v62 = vsub.f32 %v529_v24, %v626_v61  ;;  %v611_v24 = vmul.f32 1.442695, %v604_v50  ;;  %v981_v50 = vsel %vm709_vm3, %v916_v48, 0  ;;  %v675_v60 = vld [vmem:[#allocation4 + $0x8] sm:$0xff] }
 0x294   : > { %v641_v63 = vmul.f32 1.442695, %v635_v62 }
 0x295   : > { %v631_v1 = vpop.permute.xlu1 %630 }
 0x296   : > { %1542 = vpow2.f32 %v641_v63  ;;  %v636_v2 = vsub.f32 %v2131_v25, %v631_v1 }
 0x298   : > { %v1539_v4 = vpop.eup %1538  ;;  %v643_v5 = vmul.f32 1.442695, %v636_v2 }
 0x299   : > { %v653_v6 = vsel %vm379_vm0, %v1539_v4, 0.0  ;;  %v702_v7 = vpack.c.bf16 %v1539_v4, %v1539_v4 }
 0x29a   : > { %1544 = vpow2.f32 %v643_v5  ;;  %654 = vadd.xlane.f32.xlu0 %v653_v6  ;;  %v676_v5 = vld [vmem:[#allocation4 + $0x10] sm:$0xff] }
 0x29b   : > { %1402 = vmatmul.mubr.msk.bf16.vlgmr.msra.gmra.mrb[8].mxu0 %vm379_vm0, %v702_v7  ;;  %1546 = vpow2.f32 %v605_v15 }
 0x29c   : > { %v1541_v10 = vpop.eup %1540  ;;  %1412 = vmatpush3.bf16.msra.mxu0 %v803_v8  ;;  %1413 = vmatprep.mubr.msk.bf16.mxu0 %vm1779_vm1, %v1778_v0  ;;  %1548 = vpow2.f32 %v607_v21 }
 0x29d   : > { %v656_v11 = vsel %vm379_vm0, %v1541_v10, 0.0  ;;  %v703_v12 = vpack.c.bf16 %v1541_v10, %v1541_v10  ;;  %1423 = vmatprep.subr.bf16.mxu0 %v1778_v0  ;;  %1550 = vpow2.f32 %v609_v22 }
 0x29e   : > { %657 = vadd.xlane.f32.xlu1 %v656_v11  ;;  %1552 = vpow2.f32 %v611_v24 }
 0x29f   : > { %1408 = vmatmul.mubr.msk.bf16.vlgmr.msra.gmra.mrb[8].mxu1 %vm379_vm0, %v703_v12  ;;  %v677_v12 = vld [vmem:[#allocation4 + $0x18] sm:$0xff] }
 0x2a0   : > { %v1543_v14 = vpop.eup %1542  ;;  %1418 = vmatpush3.bf16.msra.mxu1 %v849_v13  ;;  %1419 = vmatprep.mubr.msk.bf16.mxu1 %vm1779_vm1, %v1778_v0 }
 0x2a1   : > { %v659_v16 = vsel %vm379_vm0, %v1543_v14, 0.0  ;;  %v704_v17 = vpack.c.bf16 %v1543_v14, %v1543_v14  ;;  %1429 = vmatprep.subr.bf16.mxu1 %v1778_v0 }
 0x2a2   : > { %660 = vadd.xlane.f32.xlu1 %v659_v16 }
 0x2a3   : > { %1414 = vmatmul.mubr.msk.bf16.vlgmr.msra.gmra.mrb[12].mxu0 %vm379_vm0, %v704_v17 }
 0x2a4   : > { %v1545_v18 = vpop.eup %1544  ;;  %1425 = vmatprep.mubr.msk.bf16.mxu0 %vm1779_vm1, %v1778_v0  ;;  %1424 = vmatpush3.bf16.msra.mxu0 %v935_v53 }
 0x2a5   : > { %v662_v19 = vsel %vm379_vm0, %v1545_v18, 0.0  ;;  %v705_v20 = vpack.c.bf16 %v1545_v18, %v1545_v18  ;;  %v1547_v23 = vpop.eup %1546  ;;  %1435 = vmatprep.subr.bf16.mxu0 %v1778_v0 }
 0x2a6   : > { %663 = vadd.xlane.f32.xlu1 %v662_v19  ;;  %v1549_v25 = vpop.eup %1548  ;;  %v649_v29 = vmul.f32 %v1547_v23, %v645_v28 }
 0x2a7   : > { %1420 = vmatmul.mubr.msk.bf16.vlgmr.msra.gmra.mrb[12].mxu1 %vm379_vm0, %v705_v20  ;;  %v1551_v26 = vpop.eup %1550  ;;  %v650_v33 = vmul.f32 %v1549_v25, %v646_v31 }
 0x2a8   : > { %1431 = vmatprep.mubr.msk.bf16.mxu1 %vm1779_vm1, %v1778_v0  ;;  %v1553_v27 = vpop.eup %1552  ;;  %v651_v37 = vmul.f32 %v1551_v26, %v647_v35  ;;  %1430 = vmatpush3.bf16.msra.mxu1 %v981_v50 }
 0x2a9   : > { %v652_v42 = vmul.f32 %v1553_v27, %v648_v39  ;;  %1441 = vmatprep.subr.bf16.mxu1 %v1778_v0 }
 0x2b0   : > { %680 = vperm.xlu0 %1536, %v1547_v23  }
 0x2b7   : > { %685 = vperm.xlu1 %1537, %v1549_v25  }
 0x2bb   : > { %690 = vperm.xlu1 %1537, %v1551_v26  }
 0x2bf   : > { %695 = vperm.xlu1 %1537, %v1553_v27   ;;  %v1097_v27 = vld [vmem:[#allocation11 + $0xc] sm:$0xf] }
 0x327   : > { %v655_v30 = vpop.xlane.xlu0 %654 }
 0x328   : > { %v665_v32 = vadd.f32 %v655_v30, %v649_v29  ;;  %v1102_v30 = vsel %vm709_vm3, %v1097_v27, 0 }
 0x32a   : > { %670 = vst.msk [vmem:[#allocation3] sm:$0xff] %vm370_vm2, %v665_v32 }
 0x32b   : > { %v658_v34 = vpop.xlane.xlu1 %657 }
 0x32c   : > { %v666_v36 = vadd.f32 %v658_v34, %v650_v33  ;;  %v1036_v33 = vld [vmem:[#allocation11 + $0x8] sm:$0xf] }
 0x32e   : > { %671 = vst.msk [vmem:[#allocation3 + $0x8] sm:$0xff] %vm370_vm2, %v666_v36  ;;  %v1041_v36 = vsel %vm709_vm3, %v1036_v33, 0 }
 0x32f   : > { %v661_v38 = vpop.xlane.xlu1 %660  ;;  %v681_v57 = vpop.permute.xlu0 %680 }
 0x330   : > { %v667_v40 = vadd.f32 %v661_v38, %v651_v37  ;;  %v698_v59 = vmul.f32 %v681_v57, %v674_v56 }
 0x331   : > { %v906_v41 = vld [vmem:[#allocation3] sm:$0xff] }
 0x332   : > { %672 = vst.msk [vmem:[#allocation3 + $0x10] sm:$0xff] %vm370_vm2, %v667_v40  ;;  %1554 = vrcp.f32 %v906_v41 }
 0x333   : > { %v664_v43 = vpop.xlane.xlu1 %663 }
 0x334   : > { %v668_v44 = vadd.f32 %v664_v43, %v652_v42 }
 0x335   : > { %v918_v45 = vld [vmem:[#allocation3 + $0x8] sm:$0xff] }
 0x336   : > { %673 = vst.msk [vmem:[#allocation3 + $0x18] sm:$0xff] %vm370_vm2, %v668_v44  ;;  %1556 = vrcp.f32 %v918_v45 }
 0x337   : > { %v686_v58 = vpop.permute.xlu1 %685 }
 0x338   : > { %v699_v3 = vmul.f32 %v686_v58, %v675_v60  ;;  %v1343_v58 = vld [vmem:[%s2301_s4] ss:$0 sm:$0xff] }
 0x339   : > { %v1024_v46 = vld [vmem:[#allocation3 + $0x10] sm:$0xff] }
 0x33a   : > { %1558 = vrcp.f32 %v1024_v46 }
 0x33b   : > { %v691_v1 = vpop.permute.xlu1 %690 }
 0x33c   : > { %v1555_v47 = vpop.eup %1554  ;;  %v700_v10 = vmul.f32 %v691_v1, %v676_v5 }
 0x33d   : > { %911 = vperm.xlu0 %1536, %v1555_v47   ;;  %v1085_v49 = vld [vmem:[#allocation3 + $0x18] sm:$0xff] }
 0x33e   : > { %1560 = vrcp.f32 %v1085_v49 }
 0x33f   : > { %v696_v13 = vpop.permute.xlu1 %695 }
 0x340   : > { %v1557_v52 = vpop.eup %1556  ;;  %v701_v18 = vmul.f32 %v696_v13, %v677_v12 }
 0x341   : > { %924 = vperm.xlu1 %1537, %v1557_v52  }
 0x344   : > { %v1559_v54 = vpop.eup %1558 }
 0x345   : > { %1030 = vperm.xlu1 %1537, %v1559_v54  }
 0x348   : > { %v1561_v55 = vpop.eup %1560 }
 0x349   : > { %1091 = vperm.xlu0 %1536, %v1561_v55  }
 0x36e   : > { %v747_v61 = vpop.f32.mrb[8].mxu0 }
 0x36f   : > { %v891_v62 = vadd.f32 %v747_v61, %v698_v59  ;;  %v1403_v63 = vpop.f32.mrb[9].mxu0 }
 0x370   : > { %v750_v2 = vpop.f32.mrb[10].mxu0 }
 0x371   : > { %895 = vst.msk [vmem:[#allocation4] sm:$0xff] %vm379_vm0, %v891_v62  ;;  %v1404_v4 = vpop.f32.mrb[11].mxu0 }
 0x372   : > { %v793_v6 = vpop.f32.mrb[8].mxu1 }
 0x373   : > { %v892_v7 = vadd.f32 %v793_v6, %v699_v3  ;;  %v1409_v8 = vpop.f32.mrb[9].mxu1 }
 0x374   : > { %v796_v9 = vpop.f32.mrb[10].mxu1 }
 0x375   : > { %896 = vst.msk [vmem:[#allocation4 + $0x8] sm:$0xff] %vm379_vm0, %v892_v7  ;;  %v1410_v11 = vpop.f32.mrb[11].mxu1 }
 0x376   : > { %v839_v14 = vpop.f32.mrb[12].mxu0 }
 0x377   : > { %v893_v15 = vadd.f32 %v839_v14, %v700_v10  ;;  %v1415_v16 = vpop.f32.mrb[13].mxu0 }
 0x378   : > { %v842_v17 = vpop.f32.mrb[14].mxu0  ;;  %v908_v25 = vld [vmem:[#allocation4] sm:$0xff] }
 0x379   : > { %897 = vst.msk [vmem:[#allocation4 + $0x10] sm:$0xff] %vm379_vm0, %v893_v15  ;;  %v1416_v19 = vpop.f32.mrb[15].mxu0 }
 0x37a   : > { %v885_v20 = vpop.f32.mrb[12].mxu1 }
 0x37b   : > { %v894_v21 = vadd.f32 %v885_v20, %v701_v18  ;;  %v1421_v22 = vpop.f32.mrb[13].mxu1 }
 0x37c   : > { %v888_v23 = vpop.f32.mrb[14].mxu1  ;;  %v921_v31 = vld [vmem:[#allocation4 + $0x8] sm:$0xff] }
 0x37d   : > { %898 = vst.msk [vmem:[#allocation4 + $0x18] sm:$0xff] %vm379_vm0, %v894_v21  ;;  %v1422_v24 = vpop.f32.mrb[15].mxu1 }
 0x380   : > { %v1027_v38 = vld [vmem:[#allocation4 + $0x10] sm:$0xff] }
 0x384   : > { %v1088_v40 = vld [vmem:[#allocation4 + $0x18] sm:$0xff] }
 0x3bc   : > { %v912_v26 = vpop.permute.xlu0 %911 }
 0x3bd   : > { %v914_v28 = vmul.f32 %v912_v26, %v908_v25 }
 0x3bf   : > { %v915_v29 = vpack.c.bf16 %v914_v28, %v914_v28 }
 0x3c0   : > { %v925_v32 = vpop.permute.xlu1 %924 }
 0x3c1   : > { %v927_v34 = vmul.f32 %v925_v32, %v921_v31  ;;  %1432 = vmatmul.mubr.msk.bf16.vlgmr.msra.gmra.mrb[16].mxu1 %vm379_vm0, %v915_v29 }
 0x3c2   : > { %1442 = vmatpush3.bf16.msra.mxu1 %v1102_v30  ;;  %1443 = vmatprep.mubr.msk.bf16.mxu1 %vm1779_vm1, %v1778_v0 }
 0x3c3   : > { %v928_v35 = vpack.c.bf16 %v927_v34, %v927_v34 }
 0x3c4   : > { %v1031_v37 = vpop.permute.xlu1 %1030 }
 0x3c5   : > { %1426 = vmatmul.mubr.msk.bf16.vlgmr.msra.gmra.mrb[16].mxu0 %vm379_vm0, %v928_v35  ;;  %v1033_v39 = vmul.f32 %v1031_v37, %v1027_v38 }
 0x3c6   : > { %1436 = vmatpush3.bf16.msra.mxu0 %v1041_v36  ;;  %1437 = vmatprep.mubr.msk.bf16.mxu0 %vm1779_vm1, %v1778_v0 }
 0x3c7   : > { %v1034_v43 = vpack.c.bf16 %v1033_v39, %v1033_v39 }
 0x3c8   : > { %v1092_v41 = vpop.permute.xlu0 %1091 }
 0x3c9   : > { %v1094_v42 = vmul.f32 %v1092_v41, %v1088_v40 }
 0x3cb   : > { %v1095_v44 = vpack.c.bf16 %v1094_v42, %v1094_v42 }
 0x3cd   : > { %1438 = vmatmul.mubr.msk.bf16.vlgmr.msra.gmra.mrb[20].mxu0 %vm379_vm0, %v1034_v43  ;;  %1444 = vmatmul.mubr.msk.bf16.vlgmr.msra.gmra.mrb[20].mxu1 %vm379_vm0, %v1095_v44 }
 0x494   : > { %v1017_v45 = vpop.f32.mrb[16].mxu1 }
 0x495   : > { %v1433_v46 = vpop.f32.mrb[17].mxu1 }
 0x496   : > { %v1020_v47 = vpop.f32.mrb[18].mxu1 }
 0x497   : > { %v1434_v48 = vpop.f32.mrb[19].mxu1 }
 0x498   : > { %v971_v49 = vpop.f32.mrb[16].mxu0 }
 0x499   : > { %v1018_v50 = vadd.f32 %v1017_v45, %v971_v49  ;;  %v1427_v51 = vpop.f32.mrb[17].mxu0 }
 0x49a   : > { %v974_v0 = vpop.f32.mrb[18].mxu0 }
 0x49b   : > { %v1428_v52 = vpop.f32.mrb[19].mxu0 }
 0x4a0   : > { %v1077_v53 = vpop.f32.mrb[20].mxu0  ;;  %v1138_v54 = vpop.f32.mrb[20].mxu1 }
 0x4a1   : > { %v1083_v55 = vadd.f32 %v1077_v53, %v1018_v50  ;;  %v1439_v56 = vpop.f32.mrb[21].mxu0  ;;  %v1445_v57 = vpop.f32.mrb[21].mxu1 }
 0x4a2   : > { %v1080_v59 = vpop.f32.mrb[22].mxu0  ;;  %v1141_v60 = vpop.f32.mrb[22].mxu1 }
 0x4a3   : > { %v1144_v61 = vadd.f32 %v1138_v54, %v1083_v55  ;;  %v1440_v62 = vpop.f32.mrb[23].mxu0  ;;  %v1446_v63 = vpop.f32.mrb[23].mxu1 }
 0x4a5   : > { %v1152_v1 = vadd.f32 %v1343_v58, %v1144_v61 }
 0x4a7   : > { %1154 = vst.msk [vmem:[%s364_s16] sm:$0xff] %vm1153_vm4, %v1152_v1 }
 0x4a8   : > { %1693 = shalt.err (!%p1690_p4)
}
 0x4a9   : > { %s1694_s27 = scalar_lea.hbm %s2248_s24, 128  ;;  %s1698_s1 = scalar_lea.hbm %s2302_s5, 256 }
 0x4aa   : > { %p1695_p3 = scmp.ne.s32.totalorder %s2248_s24, %s1694_s27  ;;  %p1699_p8 = scmp.lt.u32.totalorder %s2248_s24, %s2302_s5 }
 0x4ab   : > { %p1700_p12 = scmp.lt.u32.totalorder %s1698_s1, %s1694_s27  ;;  %p1702_p2 = scmp.lt.u32.totalorder %s1694_s27, %s2248_s24 }
 0x4ac   : > { %p1696_p6 = pnand %p1695_p3, %p2349_p13 }
 0x4ad   : > { %p1701_p1 = por %p1700_p12, %p1699_p8 }
 0x4ae   : > { %p1697_p9 = pneg %p1696_p6 }
 0x4af   : > { %p1703_p11 = por %p1702_p2, %p1701_p1 }
 0x4b1   : > { %p1704_p0 = pnand %p1703_p11, %p1697_p9 }
 0x4b3   : > { %1707 = shalt.err (!%p1704_p0)
}
 0x4b4   : > { %1457 = dma.vmem_to_hbm [thread:$0]  (%p2349_p13), %s2250_s9, 128, %s2248_s24, %s1156_s28  }
 0x4b5 PF: > { %s2350_s13 = sld [smem:[#allocation20_spill]]  ;;  %s1182_s7 = sand.u32 1, %s1750_s18  }
 0x4b6   : > { %p2351_p5 = scmp.ne.s32.totalorder %s2335_s12, 0  ;;  %s1183_s22 = scalar_lea.sflag [#allocation7], %s1182_s7 }
 0x4bb   : > { %p2352_p10 = scmp.ge.s32.totalorder %s2350_s13, 2 }
 0x4bd   : > { %p1474_p7 = pnand %p2352_p10, %p2351_p5 }
 0x4bf   : > { %1745 = dma.done.wait (!%p1474_p7), %s1183_s22, 128  }
 0x4c0   : > { %1747 = vsyncadd (!%p1474_p7), %s1183_s22, 4294967168  ;;  %s25_s23 = sadd.s32 1, %s2350_s13   ;;  %s2353_s25 = sld [smem:[#allocation18_spill]] }
 0x4c1   : > { %p22_p4 = scmp.ge.s32.totalorder %s25_s23, 4   ;;  %s2354_s20 = sld [smem:[#allocation22_spill]] }
 0x4c2   : > { %s2355_s21 = sld [smem:[#allocation19_spill]]  ;;  %s2356_s22 = sld [smem:[#allocation21_spill]] }
 0x4c3   : > { %s2357_s18 = smov %s1754_s19  ;;  %24 = sbr.rel (!%p22_p4) target bundleno = 12 (0xc), region = 130 }
 0x4c6   : > { %s2358_s19 = smov %s2353_s25 }
 0x4ca   :  { %1188 = vsyncpa [#allocation6], 1 }
 0x4cb   :  { %1190 = vsyncpa [#allocation6 + $0x1], 1 }
 0x4cc   :  { %1191 = vsyncpa [#allocation9], 1 }
 0x4cd   :  { %1193 = vsyncpa [#allocation9 + $0x1], 1 }
 0x4ce   :  { %1194 = vsyncpa [#allocation12], 1 }
 0x4cf   :  { %1195 = vsyncpa [#allocation7], 1 }
 0x4d0   :  { %1197 = vsyncpa [#allocation7 + $0x1], 1 }

</bundles_post_ra>
